<compile_context>
chip_gen: v7x
topology: tpu7x:2x2x1
jax: 0.10.0
libtpu: 0.0.40
codegen_flags: <defaults>
</compile_context>

<pallas_src>
import jax
import jax.numpy as jnp
import numpy as np
from jax.experimental import pallas as pl
from jax.experimental.pallas import tpu as pltpu


# ----------------------------------------------------------------------------
# Fused Pallas kernel: whole discriminator forward in one call.
# ----------------------------------------------------------------------------
def _discriminator_kernel(*refs):
    """refs = [x0, (select, wcat, ep) * n_layers, head_w, head_pair, head_b, out]."""
    n_layers = (len(refs) - 5) // 3
    x_ref = refs[0]
    head_w_ref, head_pair_ref, head_b_ref = refs[1 + 3 * n_layers:4 + 3 * n_layers]
    o_ref = refs[-1]

    x = x_ref[...]                                      # bf16 (N*Hin, Win*Cin)
    acc = None
    for layer in range(n_layers):
        s_ref, w_ref, ep_ref = refs[1 + 3 * layer:4 + 3 * layer]
        d = ep_ref.shape[1]                             # Wout*Cout (256 here)

        # Conv2d(3x3, stride 2, pad 1):
        #  (1) one lane-dense bf16 matmul folds the kw taps + input channels:
        #      ycat[:, kh*d:(kh+1)*d] == X @ Wfold[kh]
        ycat = jnp.dot(x, w_ref[...], preferred_element_type=jnp.float32)
        #  (2) stride-2 kh taps as 0/1 row-selection matmuls (tiny, MXU) -- no
        #      strided slices or sublane relayouts needed inside the kernel.
        s = s_ref[...]                                  # f32 (3, N*Hout, N*Hin)
        acc = jnp.dot(s[0], ycat[:, :d], preferred_element_type=jnp.float32)
        acc = acc + jnp.dot(s[1], ycat[:, d:2 * d], preferred_element_type=jnp.float32)
        acc = acc + jnp.dot(s[2], ycat[:, 2 * d:3 * d], preferred_element_type=jnp.float32)

        ep = ep_ref[...]                                # f32 (3, Wout*Cout) packed epilogue
        acc = acc + ep[0:1, :]                          # conv bias
        acc = jnp.where(acc > 0, acc, 0.2 * acc)        # LeakyReLU(0.2)
        # Dropout2d(0.25): identity at inference.
        acc = acc * ep[1:2, :] + ep[2:3, :]             # BatchNorm2d eval affine (eps=0.8)

        if layer + 1 < n_layers:
            x = acc.astype(jnp.bfloat16)                # bf16 storage for next layer

    # Head: Linear(128*n*n, 1) + Sigmoid.  PyTorch's NCHW flatten order is folded
    # into head_w at build time; the per-sample row grouping is a tiny 0/1 matmul.
    red = jnp.dot(head_pair_ref[...], acc * head_w_ref[...],
                  preferred_element_type=jnp.float32)   # (N, Wout*Cout)
    logits = jnp.sum(red, axis=1, keepdims=True) + head_b_ref[...]
    o_ref[...] = jax.nn.sigmoid(logits)


def discriminator_forward(img_nchw, kparams):
    n, c, h, w = img_nchw.shape
    # NCHW -> (N*H, W*C): rows = (n, h), lanes = (w, c); bf16 storage.
    x0 = jnp.transpose(img_nchw, (0, 2, 3, 1)).reshape(n * h, w * c).astype(jnp.bfloat16)

    flat = [x0]
    for lp in kparams["layers"]:
        flat.extend([lp["select"], lp["wcat"], lp["ep"]])
    flat.extend([kparams["head_w"], kparams["head_pair"], kparams["head_b"]])

    vmem = pl.BlockSpec(memory_space=pltpu.MemorySpace.VMEM)
    # NOTE: at batch=2 the whole net is one tiny VMEM-resident program; for large
    # batches one would grid over the (n,h) row dimension with
    # dimension_semantics=("parallel",) to engage the second TensorCore on v7x.
    return pl.pallas_call(
        _discriminator_kernel,
        out_shape=jax.ShapeDtypeStruct((n, 1), jnp.float32),
        in_specs=[vmem] * len(flat),
        out_specs=vmem,
    )(*flat)


# ----------------------------------------------------------------------------
# Host-side parameter folding (done once, offline).
# ----------------------------------------------------------------------------
def _fold_conv_weight(w_oihw, w_in, w_out):
    """PyTorch (Cout,Cin,3,3) -> block-banded (Win*Cin, 3*Wout*Cout).

    Column block kh*D + wo*Cout + co holds w[co, ci, kh, kw] at row wi*Cin + ci
    with wi = 2*wo + kw - 1 (zero outside the image), so that
    (X @ Wcat)[:, kh*D:(kh+1)*D] is the kh-th row-tap of the stride-2 conv."""
    c_out, c_in, _, _ = w_oihw.shape
    d = w_out * c_out
    wcat = np.zeros((w_in * c_in, 3 * d), np.float32)
    for kh in range(3):
        for kw in range(3):
            for wo in range(w_out):
                wi = 2 * wo + kw - 1
                if 0 <= wi < w_in:
                    wcat[wi * c_in:(wi + 1) * c_in,
                         kh * d + wo * c_out:kh * d + (wo + 1) * c_out] = w_oihw[:, :, kh, kw].T
    return wcat


def _make_select(batch, h_in, h_out):
    """0/1 row-selection matrices for the stride-2 kh taps (zero padding built in)."""
    s = np.zeros((3, batch * h_out, batch * h_in), np.float32)
    for kh in range(3):
        for n in range(batch):
            for ho in range(h_out):
                hi = 2 * ho + kh - 1
                if 0 <= hi < h_in:
                    s[kh, n * h_out + ho, n * h_in + hi] = 1.0
    return s


def make_params(key, channels, img_size, batch):
    feats = [(channels, 16, False), (16, 32, True), (32, 64, True), (64, 128, True)]
    eps = 0.8  # nn.BatchNorm2d(out_feat, 0.8) -> eps = 0.8
    layers, ref_convs = [], []
    h = img_size
    for c_in, c_out, norm in feats:
        key, k_w, k_b, k_g, k_bt = jax.random.split(key, 5)
        w = jax.random.normal(k_w, (c_out, c_in, 3, 3), jnp.float32) * 0.1
        w = w.astype(jnp.bfloat16).astype(jnp.float32)   # kernel stores weights in bf16
        b = jax.random.normal(k_b, (c_out,), jnp.float32) * 0.1
        if norm:
            gamma = 1.0 + 0.1 * jax.random.normal(k_g, (c_out,), jnp.float32)
            beta = 0.1 * jax.random.normal(k_bt, (c_out,), jnp.float32)
            run_mean = jnp.zeros((c_out,), jnp.float32)
            run_var = jnp.ones((c_out,), jnp.float32)
            scale = gamma / jnp.sqrt(run_var + eps)
            shift = beta - run_mean * scale
        else:
            scale = jnp.ones((c_out,), jnp.float32)
            shift = jnp.zeros((c_out,), jnp.float32)

        h_in = w_in = h
        h_out = w_out = h // 2
        wcat = _fold_conv_weight(np.asarray(w), w_in, w_out)
        select = _make_select(batch, h_in, h_out)
        ep = np.stack([np.tile(np.asarray(b), w_out),          # bias   (tiled over wo)
                       np.tile(np.asarray(scale), w_out),      # BN scale
                       np.tile(np.asarray(shift), w_out)]).astype(np.float32)
        layers.append(dict(select=jnp.asarray(select),
                           wcat=jnp.asarray(wcat).astype(jnp.bfloat16),
                           ep=jnp.asarray(ep)))
        ref_convs.append((w, b, scale, shift))
        h = h_out

    # Linear(128*n*n, 1) head: fold the PyTorch NCHW flatten order + per-sample row
    # grouping into the weights so no runtime transpose/reshape is needed.
    n_lin = img_size // 16
    c_last = feats[-1][1]
    key, k_w, k_b = jax.random.split(key, 3)
    lin_w = jax.random.normal(k_w, (1, c_last * n_lin * n_lin), jnp.float32) * 0.05
    lin_b = jax.random.normal(k_b, (1,), jnp.float32) * 0.05
    lw3 = np.asarray(lin_w).reshape(c_last, n_lin, n_lin)                 # [c, h, w]
    head_w = np.transpose(lw3, (1, 2, 0)).reshape(n_lin, n_lin * c_last)  # [h, (w, c)]
    head_w = np.tile(head_w, (batch, 1)).astype(np.float32)               # (N*H4, W4*C4)
    head_pair = np.kron(np.eye(batch), np.ones((1, n_lin))).astype(np.float32)  # (N, N*H4)

    kparams = dict(layers=layers,
                   head_w=jnp.asarray(head_w),
                   head_pair=jnp.asarray(head_pair),
                   head_b=jnp.asarray(lin_b).reshape(1, 1))
    ref_params = dict(convs=ref_convs, lin_w=lin_w, lin_b=lin_b)
    return kparams, ref_params


# ----------------------------------------------------------------------------
# Plain-JAX reference (same eval-mode semantics, same bf16 activation storage).
# ----------------------------------------------------------------------------
def reference_forward(img_nchw, ref_params):
    x = jnp.transpose(img_nchw, (0, 2, 3, 1)).astype(jnp.float32)   # NHWC
    for w, b, scale, shift in ref_params["convs"]:
        x = x.astype(jnp.bfloat16).astype(jnp.float32)
        w_hwio = jnp.transpose(w, (2, 3, 1, 0))
        y = jax.lax.conv_general_dilated(
            x, w_hwio, window_strides=(2, 2), padding=((1, 1), (1, 1)),
            dimension_numbers=("NHWC", "HWIO", "NHWC"),
            precision=jax.lax.Precision.HIGHEST)
        y = y + b
        y = jnp.where(y > 0, y, 0.2 * y)
        x = y * scale + shift
    feat = jnp.transpose(x, (0, 3, 1, 2)).reshape(x.shape[0], -1)   # PyTorch out.view(N,-1)
    logits = jnp.dot(feat, ref_params["lin_w"].T,
                     precision=jax.lax.Precision.HIGHEST) + ref_params["lin_b"]
    return jax.nn.sigmoid(logits)


if __name__ == "__main__":
    key = jax.random.PRNGKey(0)
    batch, channels, img_size = 2, 1, 32   # fashion-MNIST-like: 1 channel, 32x32

    k_p, k_x = jax.random.split(key)
    kparams, ref_params = make_params(k_p, channels, img_size, batch)
    img = jax.random.normal(k_x, (batch, channels, img_size, img_size), jnp.float32)

    validity = jax.block_until_ready(jax.jit(discriminator_forward)(img, kparams))
    assert validity.shape == (batch, 1)
    assert bool(jnp.all((validity >= 0.0) & (validity <= 1.0)))

    # Cross-check the fused/folded kernel against the straightforward reference.
    ref = jax.block_until_ready(reference_forward(img, ref_params))
    assert bool(jnp.all(jnp.abs(validity - ref) < 1e-2)), (validity, ref)

    print("KERNEL_OK")
</pallas_src>

<mosaic_0001>
module attributes {stable_mosaic.version = 11 : i64} {
  func.func @_discriminator_kernel(%arg0: memref<64x32xbf16, #tpu.memory_space<vmem>>, %arg1: memref<3x32x64xf32, #tpu.memory_space<vmem>>, %arg2: memref<32x768xbf16, #tpu.memory_space<vmem>>, %arg3: memref<3x256xf32, #tpu.memory_space<vmem>>, %arg4: memref<3x16x32xf32, #tpu.memory_space<vmem>>, %arg5: memref<256x768xbf16, #tpu.memory_space<vmem>>, %arg6: memref<3x256xf32, #tpu.memory_space<vmem>>, %arg7: memref<3x8x16xf32, #tpu.memory_space<vmem>>, %arg8: memref<256x768xbf16, #tpu.memory_space<vmem>>, %arg9: memref<3x256xf32, #tpu.memory_space<vmem>>, %arg10: memref<3x4x8xf32, #tpu.memory_space<vmem>>, %arg11: memref<256x768xbf16, #tpu.memory_space<vmem>>, %arg12: memref<3x256xf32, #tpu.memory_space<vmem>>, %arg13: memref<4x256xf32, #tpu.memory_space<vmem>>, %arg14: memref<2x4xf32, #tpu.memory_space<vmem>>, %arg15: memref<1x1xf32, #tpu.memory_space<vmem>>, %arg16: memref<2x1xf32, #tpu.memory_space<vmem>>) attributes {dimension_semantics = [], scalar_prefetch = 0 : i64, scratch_operands = 0 : i64, tpu.core_type = #tpu.core_type<tc>} {
    %c0 = arith.constant 0 : index
    %c0_0 = arith.constant 0 : index
    %0 = vector.load %arg0[%c0, %c0_0] : memref<64x32xbf16, #tpu.memory_space<vmem>>, vector<64x32xbf16>
    %c0_1 = arith.constant 0 : index
    %c0_2 = arith.constant 0 : index
    %1 = vector.load %arg2[%c0_1, %c0_2] : memref<32x768xbf16, #tpu.memory_space<vmem>>, vector<32x768xbf16>
    %cst = arith.constant dense<0.000000e+00> : vector<64x768xf32>
    %2 = tpu.matmul %0, %1, %cst {dimension_numbers = #tpu.dot_dimension_numbers<[1], [0], [0], [1], [0, 0, 1, 1], [], []>} : vector<64x32xbf16>, vector<32x768xbf16>, vector<64x768xf32> -> vector<64x768xf32>
    %c0_3 = arith.constant 0 : index
    %c0_4 = arith.constant 0 : index
    %c0_5 = arith.constant 0 : index
    %3 = vector.load %arg1[%c0_3, %c0_4, %c0_5] : memref<3x32x64xf32, #tpu.memory_space<vmem>>, vector<3x32x64xf32>
    %4 = vector.extract_strided_slice %3 {offsets = [0, 0, 0], sizes = [1, 32, 64], strides = [1, 1, 1]} : vector<3x32x64xf32> to vector<1x32x64xf32>
    %5 = vector.shape_cast %4 : vector<1x32x64xf32> to vector<32x64xf32>
    %6 = vector.extract_strided_slice %2 {offsets = [0, 0], sizes = [64, 256], strides = [1, 1]} : vector<64x768xf32> to vector<64x256xf32>
    %cst_6 = arith.constant dense<0.000000e+00> : vector<32x256xf32>
    %7 = tpu.matmul %5, %6, %cst_6 {dimension_numbers = #tpu.dot_dimension_numbers<[1], [0], [0], [1], [0, 0, 1, 1], [], []>} : vector<32x64xf32>, vector<64x256xf32>, vector<32x256xf32> -> vector<32x256xf32>
    %8 = vector.extract_strided_slice %3 {offsets = [1, 0, 0], sizes = [1, 32, 64], strides = [1, 1, 1]} : vector<3x32x64xf32> to vector<1x32x64xf32>
    %9 = vector.shape_cast %8 : vector<1x32x64xf32> to vector<32x64xf32>
    %10 = vector.extract_strided_slice %2 {offsets = [0, 256], sizes = [64, 256], strides = [1, 1]} : vector<64x768xf32> to vector<64x256xf32>
    %cst_7 = arith.constant dense<0.000000e+00> : vector<32x256xf32>
    %11 = tpu.matmul %9, %10, %cst_7 {dimension_numbers = #tpu.dot_dimension_numbers<[1], [0], [0], [1], [0, 0, 1, 1], [], []>} : vector<32x64xf32>, vector<64x256xf32>, vector<32x256xf32> -> vector<32x256xf32>
    %12 = arith.addf %7, %11 : vector<32x256xf32>
    %13 = vector.extract_strided_slice %3 {offsets = [2, 0, 0], sizes = [1, 32, 64], strides = [1, 1, 1]} : vector<3x32x64xf32> to vector<1x32x64xf32>
    %14 = vector.shape_cast %13 : vector<1x32x64xf32> to vector<32x64xf32>
    %15 = vector.extract_strided_slice %2 {offsets = [0, 512], sizes = [64, 256], strides = [1, 1]} : vector<64x768xf32> to vector<64x256xf32>
    %cst_8 = arith.constant dense<0.000000e+00> : vector<32x256xf32>
    %16 = tpu.matmul %14, %15, %cst_8 {dimension_numbers = #tpu.dot_dimension_numbers<[1], [0], [0], [1], [0, 0, 1, 1], [], []>} : vector<32x64xf32>, vector<64x256xf32>, vector<32x256xf32> -> vector<32x256xf32>
    %17 = arith.addf %12, %16 : vector<32x256xf32>
    %c0_9 = arith.constant 0 : index
    %c0_10 = arith.constant 0 : index
    %18 = vector.load %arg3[%c0_9, %c0_10] : memref<3x256xf32, #tpu.memory_space<vmem>>, vector<3x256xf32>
    %19 = vector.extract_strided_slice %18 {offsets = [0, 0], sizes = [1, 256], strides = [1, 1]} : vector<3x256xf32> to vector<1x256xf32>
    %20 = vector.broadcast %19 : vector<1x256xf32> to vector<32x256xf32>
    %21 = arith.addf %17, %20 : vector<32x256xf32>
    %cst_11 = arith.constant 0.000000e+00 : f32
    %22 = vector.broadcast %cst_11 : f32 to vector<32x256xf32>
    %23 = arith.cmpf ogt, %21, %22 : vector<32x256xf32>
    %cst_12 = arith.constant 2.000000e-01 : f32
    %24 = vector.broadcast %cst_12 : f32 to vector<32x256xf32>
    %25 = arith.mulf %24, %21 : vector<32x256xf32>
    %26 = arith.select %23, %21, %25 : vector<32x256xi1>, vector<32x256xf32>
    %27 = vector.extract_strided_slice %18 {offsets = [1, 0], sizes = [1, 256], strides = [1, 1]} : vector<3x256xf32> to vector<1x256xf32>
    %28 = vector.broadcast %27 : vector<1x256xf32> to vector<32x256xf32>
    %29 = arith.mulf %26, %28 : vector<32x256xf32>
    %30 = vector.extract_strided_slice %18 {offsets = [2, 0], sizes = [1, 256], strides = [1, 1]} : vector<3x256xf32> to vector<1x256xf32>
    %31 = vector.broadcast %30 : vector<1x256xf32> to vector<32x256xf32>
    %32 = arith.addf %29, %31 : vector<32x256xf32>
    %33 = arith.truncf %32 : vector<32x256xf32> to vector<32x256xbf16>
    %c0_13 = arith.constant 0 : index
    %c0_14 = arith.constant 0 : index
    %34 = vector.load %arg5[%c0_13, %c0_14] : memref<256x768xbf16, #tpu.memory_space<vmem>>, vector<256x768xbf16>
    %cst_15 = arith.constant dense<0.000000e+00> : vector<32x768xf32>
    %35 = tpu.matmul %33, %34, %cst_15 {dimension_numbers = #tpu.dot_dimension_numbers<[1], [0], [0], [1], [0, 0, 1, 1], [], []>} : vector<32x256xbf16>, vector<256x768xbf16>, vector<32x768xf32> -> vector<32x768xf32>
    %c0_16 = arith.constant 0 : index
    %c0_17 = arith.constant 0 : index
    %c0_18 = arith.constant 0 : index
    %36 = vector.load %arg4[%c0_16, %c0_17, %c0_18] : memref<3x16x32xf32, #tpu.memory_space<vmem>>, vector<3x16x32xf32>
    %37 = vector.extract_strided_slice %36 {offsets = [0, 0, 0], sizes = [1, 16, 32], strides = [1, 1, 1]} : vector<3x16x32xf32> to vector<1x16x32xf32>
    %38 = vector.shape_cast %37 : vector<1x16x32xf32> to vector<16x32xf32>
    %39 = vector.extract_strided_slice %35 {offsets = [0, 0], sizes = [32, 256], strides = [1, 1]} : vector<32x768xf32> to vector<32x256xf32>
    %cst_19 = arith.constant dense<0.000000e+00> : vector<16x256xf32>
    %40 = tpu.matmul %38, %39, %cst_19 {dimension_numbers = #tpu.dot_dimension_numbers<[1], [0], [0], [1], [0, 0, 1, 1], [], []>} : vector<16x32xf32>, vector<32x256xf32>, vector<16x256xf32> -> vector<16x256xf32>
    %41 = vector.extract_strided_slice %36 {offsets = [1, 0, 0], sizes = [1, 16, 32], strides = [1, 1, 1]} : vector<3x16x32xf32> to vector<1x16x32xf32>
    %42 = vector.shape_cast %41 : vector<1x16x32xf32> to vector<16x32xf32>
    %43 = vector.extract_strided_slice %35 {offsets = [0, 256], sizes = [32, 256], strides = [1, 1]} : vector<32x768xf32> to vector<32x256xf32>
    %cst_20 = arith.constant dense<0.000000e+00> : vector<16x256xf32>
    %44 = tpu.matmul %42, %43, %cst_20 {dimension_numbers = #tpu.dot_dimension_numbers<[1], [0], [0], [1], [0, 0, 1, 1], [], []>} : vector<16x32xf32>, vector<32x256xf32>, vector<16x256xf32> -> vector<16x256xf32>
    %45 = arith.addf %40, %44 : vector<16x256xf32>
    %46 = vector.extract_strided_slice %36 {offsets = [2, 0, 0], sizes = [1, 16, 32], strides = [1, 1, 1]} : vector<3x16x32xf32> to vector<1x16x32xf32>
    %47 = vector.shape_cast %46 : vector<1x16x32xf32> to vector<16x32xf32>
    %48 = vector.extract_strided_slice %35 {offsets = [0, 512], sizes = [32, 256], strides = [1, 1]} : vector<32x768xf32> to vector<32x256xf32>
    %cst_21 = arith.constant dense<0.000000e+00> : vector<16x256xf32>
    %49 = tpu.matmul %47, %48, %cst_21 {dimension_numbers = #tpu.dot_dimension_numbers<[1], [0], [0], [1], [0, 0, 1, 1], [], []>} : vector<16x32xf32>, vector<32x256xf32>, vector<16x256xf32> -> vector<16x256xf32>
    %50 = arith.addf %45, %49 : vector<16x256xf32>
    %c0_22 = arith.constant 0 : index
    %c0_23 = arith.constant 0 : index
    %51 = vector.load %arg6[%c0_22, %c0_23] : memref<3x256xf32, #tpu.memory_space<vmem>>, vector<3x256xf32>
    %52 = vector.extract_strided_slice %51 {offsets = [0, 0], sizes = [1, 256], strides = [1, 1]} : vector<3x256xf32> to vector<1x256xf32>
    %53 = vector.broadcast %52 : vector<1x256xf32> to vector<16x256xf32>
    %54 = arith.addf %50, %53 : vector<16x256xf32>
    %cst_24 = arith.constant 0.000000e+00 : f32
    %55 = vector.broadcast %cst_24 : f32 to vector<16x256xf32>
    %56 = arith.cmpf ogt, %54, %55 : vector<16x256xf32>
    %cst_25 = arith.constant 2.000000e-01 : f32
    %57 = vector.broadcast %cst_25 : f32 to vector<16x256xf32>
    %58 = arith.mulf %57, %54 : vector<16x256xf32>
    %59 = arith.select %56, %54, %58 : vector<16x256xi1>, vector<16x256xf32>
    %60 = vector.extract_strided_slice %51 {offsets = [1, 0], sizes = [1, 256], strides = [1, 1]} : vector<3x256xf32> to vector<1x256xf32>
    %61 = vector.broadcast %60 : vector<1x256xf32> to vector<16x256xf32>
    %62 = arith.mulf %59, %61 : vector<16x256xf32>
    %63 = vector.extract_strided_slice %51 {offsets = [2, 0], sizes = [1, 256], strides = [1, 1]} : vector<3x256xf32> to vector<1x256xf32>
    %64 = vector.broadcast %63 : vector<1x256xf32> to vector<16x256xf32>
    %65 = arith.addf %62, %64 : vector<16x256xf32>
    %66 = arith.truncf %65 : vector<16x256xf32> to vector<16x256xbf16>
    %c0_26 = arith.constant 0 : index
    %c0_27 = arith.constant 0 : index
    %67 = vector.load %arg8[%c0_26, %c0_27] : memref<256x768xbf16, #tpu.memory_space<vmem>>, vector<256x768xbf16>
    %cst_28 = arith.constant dense<0.000000e+00> : vector<16x768xf32>
    %68 = tpu.matmul %66, %67, %cst_28 {dimension_numbers = #tpu.dot_dimension_numbers<[1], [0], [0], [1], [0, 0, 1, 1], [], []>} : vector<16x256xbf16>, vector<256x768xbf16>, vector<16x768xf32> -> vector<16x768xf32>
    %c0_29 = arith.constant 0 : index
    %c0_30 = arith.constant 0 : index
    %c0_31 = arith.constant 0 : index
    %69 = vector.load %arg7[%c0_29, %c0_30, %c0_31] : memref<3x8x16xf32, #tpu.memory_space<vmem>>, vector<3x8x16xf32>
    %70 = vector.extract_strided_slice %69 {offsets = [0, 0, 0], sizes = [1, 8, 16], strides = [1, 1, 1]} : vector<3x8x16xf32> to vector<1x8x16xf32>
    %71 = vector.shape_cast %70 : vector<1x8x16xf32> to vector<8x16xf32>
    %72 = vector.extract_strided_slice %68 {offsets = [0, 0], sizes = [16, 256], strides = [1, 1]} : vector<16x768xf32> to vector<16x256xf32>
    %cst_32 = arith.constant dense<0.000000e+00> : vector<8x256xf32>
    %73 = tpu.matmul %71, %72, %cst_32 {dimension_numbers = #tpu.dot_dimension_numbers<[1], [0], [0], [1], [0, 0, 1, 1], [], []>} : vector<8x16xf32>, vector<16x256xf32>, vector<8x256xf32> -> vector<8x256xf32>
    %74 = vector.extract_strided_slice %69 {offsets = [1, 0, 0], sizes = [1, 8, 16], strides = [1, 1, 1]} : vector<3x8x16xf32> to vector<1x8x16xf32>
    %75 = vector.shape_cast %74 : vector<1x8x16xf32> to vector<8x16xf32>
    %76 = vector.extract_strided_slice %68 {offsets = [0, 256], sizes = [16, 256], strides = [1, 1]} : vector<16x768xf32> to vector<16x256xf32>
    %cst_33 = arith.constant dense<0.000000e+00> : vector<8x256xf32>
    %77 = tpu.matmul %75, %76, %cst_33 {dimension_numbers = #tpu.dot_dimension_numbers<[1], [0], [0], [1], [0, 0, 1, 1], [], []>} : vector<8x16xf32>, vector<16x256xf32>, vector<8x256xf32> -> vector<8x256xf32>
    %78 = arith.addf %73, %77 : vector<8x256xf32>
    %79 = vector.extract_strided_slice %69 {offsets = [2, 0, 0], sizes = [1, 8, 16], strides = [1, 1, 1]} : vector<3x8x16xf32> to vector<1x8x16xf32>
    %80 = vector.shape_cast %79 : vector<1x8x16xf32> to vector<8x16xf32>
    %81 = vector.extract_strided_slice %68 {offsets = [0, 512], sizes = [16, 256], strides = [1, 1]} : vector<16x768xf32> to vector<16x256xf32>
    %cst_34 = arith.constant dense<0.000000e+00> : vector<8x256xf32>
    %82 = tpu.matmul %80, %81, %cst_34 {dimension_numbers = #tpu.dot_dimension_numbers<[1], [0], [0], [1], [0, 0, 1, 1], [], []>} : vector<8x16xf32>, vector<16x256xf32>, vector<8x256xf32> -> vector<8x256xf32>
    %83 = arith.addf %78, %82 : vector<8x256xf32>
    %c0_35 = arith.constant 0 : index
    %c0_36 = arith.constant 0 : index
    %84 = vector.load %arg9[%c0_35, %c0_36] : memref<3x256xf32, #tpu.memory_space<vmem>>, vector<3x256xf32>
    %85 = vector.extract_strided_slice %84 {offsets = [0, 0], sizes = [1, 256], strides = [1, 1]} : vector<3x256xf32> to vector<1x256xf32>
    %86 = vector.broadcast %85 : vector<1x256xf32> to vector<8x256xf32>
    %87 = arith.addf %83, %86 : vector<8x256xf32>
    %cst_37 = arith.constant 0.000000e+00 : f32
    %88 = vector.broadcast %cst_37 : f32 to vector<8x256xf32>
    %89 = arith.cmpf ogt, %87, %88 : vector<8x256xf32>
    %cst_38 = arith.constant 2.000000e-01 : f32
    %90 = vector.broadcast %cst_38 : f32 to vector<8x256xf32>
    %91 = arith.mulf %90, %87 : vector<8x256xf32>
    %92 = arith.select %89, %87, %91 : vector<8x256xi1>, vector<8x256xf32>
    %93 = vector.extract_strided_slice %84 {offsets = [1, 0], sizes = [1, 256], strides = [1, 1]} : vector<3x256xf32> to vector<1x256xf32>
    %94 = vector.broadcast %93 : vector<1x256xf32> to vector<8x256xf32>
    %95 = arith.mulf %92, %94 : vector<8x256xf32>
    %96 = vector.extract_strided_slice %84 {offsets = [2, 0], sizes = [1, 256], strides = [1, 1]} : vector<3x256xf32> to vector<1x256xf32>
    %97 = vector.broadcast %96 : vector<1x256xf32> to vector<8x256xf32>
    %98 = arith.addf %95, %97 : vector<8x256xf32>
    %99 = arith.truncf %98 : vector<8x256xf32> to vector<8x256xbf16>
    %c0_39 = arith.constant 0 : index
    %c0_40 = arith.constant 0 : index
    %100 = vector.load %arg11[%c0_39, %c0_40] : memref<256x768xbf16, #tpu.memory_space<vmem>>, vector<256x768xbf16>
    %cst_41 = arith.constant dense<0.000000e+00> : vector<8x768xf32>
    %101 = tpu.matmul %99, %100, %cst_41 {dimension_numbers = #tpu.dot_dimension_numbers<[1], [0], [0], [1], [0, 0, 1, 1], [], []>} : vector<8x256xbf16>, vector<256x768xbf16>, vector<8x768xf32> -> vector<8x768xf32>
    %c0_42 = arith.constant 0 : index
    %c0_43 = arith.constant 0 : index
    %c0_44 = arith.constant 0 : index
    %102 = vector.load %arg10[%c0_42, %c0_43, %c0_44] : memref<3x4x8xf32, #tpu.memory_space<vmem>>, vector<3x4x8xf32>
    %103 = vector.extract_strided_slice %102 {offsets = [0, 0, 0], sizes = [1, 4, 8], strides = [1, 1, 1]} : vector<3x4x8xf32> to vector<1x4x8xf32>
    %104 = vector.shape_cast %103 : vector<1x4x8xf32> to vector<4x8xf32>
    %105 = vector.extract_strided_slice %101 {offsets = [0, 0], sizes = [8, 256], strides = [1, 1]} : vector<8x768xf32> to vector<8x256xf32>
    %cst_45 = arith.constant dense<0.000000e+00> : vector<4x256xf32>
    %106 = tpu.matmul %104, %105, %cst_45 {dimension_numbers = #tpu.dot_dimension_numbers<[1], [0], [0], [1], [0, 0, 1, 1], [], []>} : vector<4x8xf32>, vector<8x256xf32>, vector<4x256xf32> -> vector<4x256xf32>
    %107 = vector.extract_strided_slice %102 {offsets = [1, 0, 0], sizes = [1, 4, 8], strides = [1, 1, 1]} : vector<3x4x8xf32> to vector<1x4x8xf32>
    %108 = vector.shape_cast %107 : vector<1x4x8xf32> to vector<4x8xf32>
    %109 = vector.extract_strided_slice %101 {offsets = [0, 256], sizes = [8, 256], strides = [1, 1]} : vector<8x768xf32> to vector<8x256xf32>
    %cst_46 = arith.constant dense<0.000000e+00> : vector<4x256xf32>
    %110 = tpu.matmul %108, %109, %cst_46 {dimension_numbers = #tpu.dot_dimension_numbers<[1], [0], [0], [1], [0, 0, 1, 1], [], []>} : vector<4x8xf32>, vector<8x256xf32>, vector<4x256xf32> -> vector<4x256xf32>
    %111 = arith.addf %106, %110 : vector<4x256xf32>
    %112 = vector.extract_strided_slice %102 {offsets = [2, 0, 0], sizes = [1, 4, 8], strides = [1, 1, 1]} : vector<3x4x8xf32> to vector<1x4x8xf32>
    %113 = vector.shape_cast %112 : vector<1x4x8xf32> to vector<4x8xf32>
    %114 = vector.extract_strided_slice %101 {offsets = [0, 512], sizes = [8, 256], strides = [1, 1]} : vector<8x768xf32> to vector<8x256xf32>
    %cst_47 = arith.constant dense<0.000000e+00> : vector<4x256xf32>
    %115 = tpu.matmul %113, %114, %cst_47 {dimension_numbers = #tpu.dot_dimension_numbers<[1], [0], [0], [1], [0, 0, 1, 1], [], []>} : vector<4x8xf32>, vector<8x256xf32>, vector<4x256xf32> -> vector<4x256xf32>
    %116 = arith.addf %111, %115 : vector<4x256xf32>
    %c0_48 = arith.constant 0 : index
    %c0_49 = arith.constant 0 : index
    %117 = vector.load %arg12[%c0_48, %c0_49] : memref<3x256xf32, #tpu.memory_space<vmem>>, vector<3x256xf32>
    %118 = vector.extract_strided_slice %117 {offsets = [0, 0], sizes = [1, 256], strides = [1, 1]} : vector<3x256xf32> to vector<1x256xf32>
    %119 = vector.broadcast %118 : vector<1x256xf32> to vector<4x256xf32>
    %120 = arith.addf %116, %119 : vector<4x256xf32>
    %cst_50 = arith.constant 0.000000e+00 : f32
    %121 = vector.broadcast %cst_50 : f32 to vector<4x256xf32>
    %122 = arith.cmpf ogt, %120, %121 : vector<4x256xf32>
    %cst_51 = arith.constant 2.000000e-01 : f32
    %123 = vector.broadcast %cst_51 : f32 to vector<4x256xf32>
    %124 = arith.mulf %123, %120 : vector<4x256xf32>
    %125 = arith.select %122, %120, %124 : vector<4x256xi1>, vector<4x256xf32>
    %126 = vector.extract_strided_slice %117 {offsets = [1, 0], sizes = [1, 256], strides = [1, 1]} : vector<3x256xf32> to vector<1x256xf32>
    %127 = vector.broadcast %126 : vector<1x256xf32> to vector<4x256xf32>
    %128 = arith.mulf %125, %127 : vector<4x256xf32>
    %129 = vector.extract_strided_slice %117 {offsets = [2, 0], sizes = [1, 256], strides = [1, 1]} : vector<3x256xf32> to vector<1x256xf32>
    %130 = vector.broadcast %129 : vector<1x256xf32> to vector<4x256xf32>
    %131 = arith.addf %128, %130 : vector<4x256xf32>
    %c0_52 = arith.constant 0 : index
    %c0_53 = arith.constant 0 : index
    %132 = vector.load %arg14[%c0_52, %c0_53] : memref<2x4xf32, #tpu.memory_space<vmem>>, vector<2x4xf32>
    %c0_54 = arith.constant 0 : index
    %c0_55 = arith.constant 0 : index
    %133 = vector.load %arg13[%c0_54, %c0_55] : memref<4x256xf32, #tpu.memory_space<vmem>>, vector<4x256xf32>
    %134 = arith.mulf %131, %133 : vector<4x256xf32>
    %cst_56 = arith.constant dense<0.000000e+00> : vector<2x256xf32>
    %135 = tpu.matmul %132, %134, %cst_56 {dimension_numbers = #tpu.dot_dimension_numbers<[1], [0], [0], [1], [0, 0, 1, 1], [], []>} : vector<2x4xf32>, vector<4x256xf32>, vector<2x256xf32> -> vector<2x256xf32>
    %cst_57 = arith.constant dense<0.000000e+00> : vector<2xf32>
    %136 = vector.multi_reduction <add>, %135, %cst_57 [1] : vector<2x256xf32> to vector<2xf32>
    %137 = vector.shape_cast %136 : vector<2xf32> to vector<2x1xf32>
    %c0_58 = arith.constant 0 : index
    %c0_59 = arith.constant 0 : index
    %138 = vector.load %arg15[%c0_58, %c0_59] : memref<1x1xf32, #tpu.memory_space<vmem>>, vector<1x1xf32>
    %139 = vector.broadcast %138 : vector<1x1xf32> to vector<2x1xf32>
    %140 = arith.addf %137, %139 : vector<2x1xf32>
    %141 = arith.negf %140 : vector<2x1xf32>
    %142 = math.exp %141 : vector<2x1xf32>
    %cst_60 = arith.constant 1.000000e+00 : f32
    %143 = vector.broadcast %cst_60 : f32 to vector<2x1xf32>
    %144 = arith.addf %143, %142 : vector<2x1xf32>
    %145 = arith.divf %143, %144 : vector<2x1xf32>
    %c0_61 = arith.constant 0 : index
    %c0_62 = arith.constant 0 : index
    %146 = vector.load %arg16[%c0_61, %c0_62] : memref<2x1xf32, #tpu.memory_space<vmem>>, vector<2x1xf32>
    tpu.vector_store %arg16[%c0_61, %c0_62], %145 {strides = array<i32>} : memref<2x1xf32, #tpu.memory_space<vmem>>, vector<2x1xf32>,
    return
  }
}

</mosaic_0001>

<bundles_post_ra>
// kernel: discriminator_forward.1
= control target key start
LH: loop header
LB: loop body
LE: loop exit
PB: predicated region body
PF: predicated region fallthrough
CT: control target
= control target key end

     0   :  { %s5761_s0 = inlined_call_operand.vmem [shape: bf16[64,32], index: 0, kind: input, shape index: {}]   ;;  %s5762_s1 = inlined_call_operand.vmem [shape: f32[3,32,64], index: 1, kind: input, shape index: {}]   ;;  %s5763_s2 = inlined_call_operand.hbm [shape: bf16[32,768], index: 2, kind: input, shape index: {}]   ;;  %s5764_s3 = inlined_call_operand.hbm [shape: f32[3,256], index: 3, kind: input, shape index: {}]   ;;  %s5765_s4 = inlined_call_operand.hbm [shape: f32[3,16,32], index: 4, kind: input, shape index: {}]   ;;  %s5766_s5 = inlined_call_operand.hbm [shape: bf16[256,768], index: 5, kind: input, shape index: {}]   ;;  %s5767_s6 = inlined_call_operand.hbm [shape: f32[3,256], index: 6, kind: input, shape index: {}]   ;;  %s5768_s7 = inlined_call_operand.vmem [shape: f32[3,8,16], index: 7, kind: input, shape index: {}]   ;;  %s5769_s8 = inlined_call_operand.hbm [shape: bf16[256,768], index: 8, kind: input, shape index: {}]   ;;  %s5770_s9 = inlined_call_operand.hbm [shape: f32[3,256], index: 9, kind: input, shape index: {}]   ;;  %s5771_s10 = inlined_call_operand.vmem [shape: f32[3,4,8], index: 10, kind: input, shape index: {}]   ;;  %s5772_s11 = inlined_call_operand.hbm [shape: bf16[256,768], index: 11, kind: input, shape index: {}]   ;;  %s5773_s12 = inlined_call_operand.vmem [shape: f32[3,256], index: 12, kind: input, shape index: {}]   ;;  %s5774_s13 = inlined_call_operand.hbm [shape: f32[4,256], index: 13, kind: input, shape index: {}]   ;;  %s5775_s14 = inlined_call_operand.hbm [shape: f32[2,4], index: 14, kind: input, shape index: {}]   ;;  %s5776_s15 = inlined_call_operand.<no memory space> [shape: f32[1,1], index: 15, kind: input, shape index: {}]   ;;  %s5777_s16 = inlined_call_operand.vmem [shape: f32[2,1], index: 16, kind: output, shape index: {}]  }
   0x1   :  { %5779 = sst [smem:[#allocation25_spill]] %s5761_s0  ;;  %v21_v0 = vstv %s5776_s15 }
   0x2   :  { %22 = vst [vmem:[#allocation2] sm:$0x1] %v21_v0 }
   0x3   :  { %23 = vsyncpa [#allocation4], 0 }
   0x4   :  { %24 = vsyncpa [#allocation6], 0 }
   0x5   :  { %25 = vsyncpa [#allocation9], 0 }
   0x6   :  { %26 = vsyncpa [#allocation12], 0 }
   0x7   :  { %27 = vsyncpa [#allocation15], 0 }
   0x8   :  { %28 = vsyncpa [#allocation18], 0  ;;  %s5309_s23 = smov [#allocation5]   ;;  %s5077_s27 = scalar_lea.hbm %s5764_s3, 128 }
   0x9   :  { %s51_s24 = sshll.u32 %s5309_s23, 4  ;;  %p5078_p0 = scmp.ne.s32.totalorder %s5764_s3, %s5077_s27  ;;  %s52_s24 = int_to_ptr.vmem [resolvable:$true] %s51_s24 }
   0xa   :  { %p5081_p1 = scmp.lt.u32.totalorder %s5077_s27, %s5764_s3 }
   0xc   :  { %p5083_p2 = pnand %p5081_p1, %p5078_p0 }
   0xe   :  { %5086 = shalt.err (!%p5083_p2)
}
   0xf   :  { %s5087_s0 = scalar_lea.vmem %s52_s24, 128  ;;  %p5092_p4 = scmp.lt.s32.totalorder %s52_s24, %s52_s24 }
  0x10   :  { %p5088_p3 = scmp.ne.s32.totalorder %s52_s24, %s5087_s0  ;;  %p5093_p5 = scmp.lt.s32.totalorder %s5087_s0, %s5087_s0 }
  0x12   :  { %p5094_p6 = por %p5093_p5, %p5092_p4 }
  0x14   :  { %p5095_p7 = pnand %p5094_p6, %p5088_p3 }
  0x16   :  { %5098 = shalt.err (!%p5095_p7)
}
  0x17   :  { %54 = dma.hbm_to_vmem [thread:$0]  %s5764_s3, 128, %s52_s24, [#allocation6]  }
  0x18   :  { %s5310_s19 = smov [#allocation8]   ;;  %s5311_s21 = smov [#allocation11]  }
  0x19   :  { %s72_s20 = sshll.u32 %s5310_s19, 4  ;;  %s96_s22 = sshll.u32 %s5311_s21, 4  ;;  %s73_s20 = int_to_ptr.vmem [resolvable:$true] %s72_s20  ;;  %s97_s22 = int_to_ptr.vmem [resolvable:$true] %s96_s22 }
  0x1a   :  { %s5099_s26 = scalar_lea.hbm %s5766_s5, 12288 }
  0x1b   :  { %p5100_p8 = scmp.ne.s32.totalorder %s5766_s5, %s5099_s26  ;;  %p5103_p9 = scmp.lt.u32.totalorder %s5099_s26, %s5766_s5 }
  0x1d   :  { %p5105_p10 = pnand %p5103_p9, %p5100_p8 }
  0x1f   :  { %5108 = shalt.err (!%p5105_p10)
}
  0x20   :  { %s5109_s3 = scalar_lea.vmem %s73_s20, 12288  ;;  %p5114_p12 = scmp.lt.s32.totalorder %s73_s20, %s73_s20 }
  0x21   :  { %p5110_p11 = scmp.ne.s32.totalorder %s73_s20, %s5109_s3  ;;  %p5115_p13 = scmp.lt.s32.totalorder %s5109_s3, %s5109_s3 }
  0x23   :  { %p5116_p0 = por %p5115_p13, %p5114_p12 }
  0x25   :  { %p5117_p1 = pnand %p5116_p0, %p5110_p11 }
  0x27   :  { %5120 = shalt.err (!%p5117_p1)
}
  0x28   :  { %s5312_s24 = smov 384   ;;  %s5313_s15 = smov 24  }
  0x29   :  { %78 = dma.hbm_to_vmem [thread:$0]  %s5766_s5, 12288, %s73_s20, [#allocation9], %s5312_s24, %s5312_s24, %s5313_s15  }
  0x2a   :  { %s5121_s21 = scalar_lea.hbm %s5769_s8, 12288 }
  0x2b   :  { %p5122_p2 = scmp.ne.s32.totalorder %s5769_s8, %s5121_s21  ;;  %p5125_p3 = scmp.lt.u32.totalorder %s5121_s21, %s5769_s8 }
  0x2d   :  { %p5127_p4 = pnand %p5125_p3, %p5122_p2 }
  0x2f   :  { %5130 = shalt.err (!%p5127_p4)
}
  0x30   :  { %s5131_s28 = scalar_lea.vmem %s97_s22, 12288  ;;  %p5136_p6 = scmp.lt.s32.totalorder %s97_s22, %s97_s22 }
  0x31   :  { %p5132_p5 = scmp.ne.s32.totalorder %s97_s22, %s5131_s28  ;;  %p5137_p7 = scmp.lt.s32.totalorder %s5131_s28, %s5131_s28 }
  0x33   :  { %p5138_p8 = por %p5137_p7, %p5136_p6 }
  0x35   :  { %p5139_p9 = pnand %p5138_p8, %p5132_p5 }
  0x37   :  { %5142 = shalt.err (!%p5139_p9)
}
  0x38   :  { %102 = dma.hbm_to_vmem [thread:$0]  %s5769_s8, 12288, %s97_s22, [#allocation12], %s5312_s24, %s5312_s24, %s5313_s15  }
  0x39   :  { %s5314_s29 = smov [#allocation14]   ;;  %s5315_s3 = smov [#allocation3]  }
  0x3a   :  { %s120_s30 = sshll.u32 %s5314_s29, 4  ;;  %s38_s0 = sshll.u32 %s5315_s3, 4  ;;  %s121_s30 = int_to_ptr.vmem [resolvable:$true] %s120_s30  ;;  %s39_s0 = int_to_ptr.vmem [resolvable:$true] %s38_s0 }
  0x3b   :  { %s5143_s19 = scalar_lea.hbm %s5772_s11, 12288 }
  0x3c   :  { %p5144_p10 = scmp.ne.s32.totalorder %s5772_s11, %s5143_s19  ;;  %p5147_p11 = scmp.lt.u32.totalorder %s5143_s19, %s5772_s11 }
  0x3e   :  { %p5149_p12 = pnand %p5147_p11, %p5144_p10 }
  0x40   :  { %5152 = shalt.err (!%p5149_p12)
}
  0x41   :  { %s5153_s8 = scalar_lea.vmem %s121_s30, 12288  ;;  %p5158_p0 = scmp.lt.s32.totalorder %s121_s30, %s121_s30 }
  0x42   :  { %p5154_p13 = scmp.ne.s32.totalorder %s121_s30, %s5153_s8  ;;  %p5159_p1 = scmp.lt.s32.totalorder %s5153_s8, %s5153_s8 }
  0x44   :  { %p5160_p2 = por %p5159_p1, %p5158_p0 }
  0x46   :  { %p5161_p3 = pnand %p5160_p2, %p5154_p13 }
  0x48   :  { %5164 = shalt.err (!%p5161_p3)
}
  0x49   :  { %126 = dma.hbm_to_vmem [thread:$0]  %s5772_s11, 12288, %s121_s30, [#allocation15], %s5312_s24, %s5312_s24, %s5313_s15  }
  0x4a   :  { %s5165_s20 = scalar_lea.hbm %s5763_s2, 1536 }
  0x4b   :  { %p5166_p4 = scmp.ne.s32.totalorder %s5763_s2, %s5165_s20  ;;  %p5169_p5 = scmp.lt.u32.totalorder %s5165_s20, %s5763_s2 }
  0x4d   :  { %p5171_p6 = pnand %p5169_p5, %p5166_p4 }
  0x4f   :  { %5174 = shalt.err (!%p5171_p6)
}
  0x50   :  { %s5175_s19 = scalar_lea.vmem %s39_s0, 1536  ;;  %p5180_p8 = scmp.lt.s32.totalorder %s39_s0, %s39_s0 }
  0x51   :  { %p5176_p7 = scmp.ne.s32.totalorder %s39_s0, %s5175_s19  ;;  %p5181_p9 = scmp.lt.s32.totalorder %s5175_s19, %s5175_s19 }
  0x53   :  { %p5182_p10 = por %p5181_p9, %p5180_p8 }
  0x55   :  { %p5183_p11 = pnand %p5182_p10, %p5176_p7 }
  0x57   :  { %5186 = shalt.err (!%p5183_p11)
}
  0x58   :  { %44 = dma.hbm_to_vmem [thread:$0]  %s5763_s2, 1536, %s39_s0, [#allocation4], %s5312_s24, %s5312_s24, %s5313_s15  }
  0x59   :  { %s5316_s21 = smov [#allocation7]   ;;  %s5187_s8 = scalar_lea.hbm %s5765_s4, 768 }
  0x5a   :  { %s60_s23 = sshll.u32 %s5316_s21, 4  ;;  %p5188_p12 = scmp.ne.s32.totalorder %s5765_s4, %s5187_s8  ;;  %s61_s23 = int_to_ptr.vmem [resolvable:$true] %s60_s23 }
  0x5b   :  { %p5191_p13 = scmp.lt.u32.totalorder %s5187_s8, %s5765_s4 }
  0x5d   :  { %p5193_p0 = pnand %p5191_p13, %p5188_p12 }
  0x5f   :  { %5196 = shalt.err (!%p5193_p0)
}
  0x60   :  { %s5197_s20 = scalar_lea.vmem %s61_s23, 768  ;;  %p5202_p2 = scmp.lt.s32.totalorder %s61_s23, %s61_s23 }
  0x61   :  { %p5198_p1 = scmp.ne.s32.totalorder %s61_s23, %s5197_s20  ;;  %p5203_p3 = scmp.lt.s32.totalorder %s5197_s20, %s5197_s20 }
  0x63   :  { %p5204_p4 = por %p5203_p3, %p5202_p2 }
  0x65   :  { %p5205_p5 = pnand %p5204_p4, %p5198_p1 }
  0x67   :  { %5208 = shalt.err (!%p5205_p5)
}
  0x68   :  { %s5317_s2 = smov 128   ;;  %s5318_s24 = smov 8  }
  0x69   :  { %66 = dma.hbm_to_vmem [thread:$0]  %s5765_s4, 768, %s61_s23, [#allocation6], %s5317_s2, %s5317_s2, %s5318_s24  }
  0x6a   :  { %s5319_s29 = smov [#allocation10]   ;;  %s5320_s17 = smov [#allocation13]  }
  0x6b   :  { %s85_s3 = sshll.u32 %s5319_s29, 4  ;;  %s109_s18 = sshll.u32 %s5320_s17, 4  ;;  %s86_s3 = int_to_ptr.vmem [resolvable:$true] %s85_s3  ;;  %s110_s18 = int_to_ptr.vmem [resolvable:$true] %s109_s18 }
  0x6c   :  { %s5209_s30 = scalar_lea.hbm %s5767_s6, 128 }
  0x6d   :  { %p5210_p6 = scmp.ne.s32.totalorder %s5767_s6, %s5209_s30  ;;  %p5213_p7 = scmp.lt.u32.totalorder %s5209_s30, %s5767_s6 }
  0x6f   :  { %p5215_p8 = pnand %p5213_p7, %p5210_p6 }
  0x71   :  { %5218 = shalt.err (!%p5215_p8)
}
  0x72   :  { %s5219_s4 = scalar_lea.vmem %s86_s3, 128  ;;  %p5224_p10 = scmp.lt.s32.totalorder %s86_s3, %s86_s3 }
  0x73   :  { %p5220_p9 = scmp.ne.s32.totalorder %s86_s3, %s5219_s4  ;;  %p5225_p11 = scmp.lt.s32.totalorder %s5219_s4, %s5219_s4 }
  0x75   :  { %p5226_p12 = por %p5225_p11, %p5224_p10 }
  0x77   :  { %p5227_p13 = pnand %p5226_p12, %p5220_p9 }
  0x79   :  { %5230 = shalt.err (!%p5227_p13)
}
  0x7a   :  { %88 = dma.hbm_to_vmem [thread:$0]  %s5767_s6, 128, %s86_s3, [#allocation9]  }
  0x7b   :  { %s5231_s5 = scalar_lea.hbm %s5770_s9, 128 }
  0x7c   :  { %p5232_p0 = scmp.ne.s32.totalorder %s5770_s9, %s5231_s5  ;;  %p5235_p1 = scmp.lt.u32.totalorder %s5231_s5, %s5770_s9 }
  0x7e   :  { %p5237_p2 = pnand %p5235_p1, %p5232_p0 }
  0x80   :  { %5240 = shalt.err (!%p5237_p2)
}
  0x81   :  { %s5241_s0 = scalar_lea.vmem %s110_s18, 128  ;;  %p5246_p4 = scmp.lt.s32.totalorder %s110_s18, %s110_s18 }
  0x82   :  { %p5242_p3 = scmp.ne.s32.totalorder %s110_s18, %s5241_s0  ;;  %p5247_p5 = scmp.lt.s32.totalorder %s5241_s0, %s5241_s0 }
  0x84   :  { %p5248_p6 = por %p5247_p5, %p5246_p4 }
  0x86   :  { %p5249_p7 = pnand %p5248_p6, %p5242_p3 }
  0x88   :  { %5252 = shalt.err (!%p5249_p7)
}
  0x89   :  { %112 = dma.hbm_to_vmem [thread:$0]  %s5770_s9, 128, %s110_s18, [#allocation12]  }
  0x8a   :  { %s5321_s3 = smov [#allocation16]   ;;  %s5322_s19 = smov [#allocation17]  }
  0x8b   :  { %s135_s17 = sshll.u32 %s5321_s3, 4  ;;  %s145_s11 = sshll.u32 %s5322_s19, 4  ;;  %s136_s17 = int_to_ptr.vmem [resolvable:$true] %s135_s17  ;;  %s146_s11 = int_to_ptr.vmem [resolvable:$true] %s145_s11 }
  0x8c   :  { %s5253_s25 = scalar_lea.hbm %s5774_s13, 128 }
  0x8d   :  { %p5254_p8 = scmp.ne.s32.totalorder %s5774_s13, %s5253_s25  ;;  %p5257_p9 = scmp.lt.u32.totalorder %s5253_s25, %s5774_s13 }
  0x8f   :  { %p5259_p10 = pnand %p5257_p9, %p5254_p8 }
  0x91   :  { %5262 = shalt.err (!%p5259_p10)
}
  0x92   :  { %s5263_s9 = scalar_lea.vmem %s136_s17, 128  ;;  %p5268_p12 = scmp.lt.s32.totalorder %s136_s17, %s136_s17 }
  0x93   :  { %p5264_p11 = scmp.ne.s32.totalorder %s136_s17, %s5263_s9  ;;  %p5269_p13 = scmp.lt.s32.totalorder %s5263_s9, %s5263_s9 }
  0x95   :  { %p5270_p0 = por %p5269_p13, %p5268_p12 }
  0x97   :  { %p5271_p1 = pnand %p5270_p0, %p5264_p11 }
  0x99   :  { %5274 = shalt.err (!%p5271_p1)
}
  0x9a   :  { %138 = dma.hbm_to_vmem [thread:$0]  %s5774_s13, 128, %s136_s17, [#allocation15]  }
  0x9b   :  { %s5275_s5 = scalar_lea.hbm %s5775_s14, 32 }
  0x9c   :  { %p5276_p2 = scmp.ne.s32.totalorder %s5775_s14, %s5275_s5  ;;  %p5279_p3 = scmp.lt.u32.totalorder %s5275_s5, %s5775_s14 }
  0x9e   :  { %p5281_p4 = pnand %p5279_p3, %p5276_p2 }
  0xa0   :  { %5284 = shalt.err (!%p5281_p4)
}
  0xa1   :  { %s5285_s0 = scalar_lea.vmem %s146_s11, 32  ;;  %p5290_p6 = scmp.lt.s32.totalorder %s146_s11, %s146_s11 }
  0xa2   :  { %p5286_p5 = scmp.ne.s32.totalorder %s146_s11, %s5285_s0  ;;  %p5291_p7 = scmp.lt.s32.totalorder %s5285_s0, %s5285_s0 }
  0xa4   :  { %p5292_p8 = por %p5291_p7, %p5290_p6 }
  0xa6   :  { %p5293_p9 = pnand %p5292_p8, %p5286_p5 }
  0xa8   :  { %5296 = shalt.err (!%p5293_p9)
}
  0xa9   :  { %148 = dma.hbm_to_vmem [thread:$0]  %s5775_s14, 32, %s146_s11, [#allocation18]  }
  0xaa   :  { %5297 = dma.done.wait [#allocation4], 1536  }
  0xab   :  { %5298 = vsyncadd [#allocation4], 4294965760 }
  0xac   :  { %5299 = dma.done.wait [#allocation6], 896  }
  0xad   :  { %5300 = vsyncadd [#allocation6], 4294966400 }
  0xae   :  { %5301 = dma.done.wait [#allocation9], 12416  }
  0xaf   :  { %5302 = vsyncadd [#allocation9], 4294954880 }
  0xb0   :  { %5303 = dma.done.wait [#allocation12], 12416  }
  0xb1   :  { %5304 = vsyncadd [#allocation12], 4294954880 }
  0xb2   :  { %5305 = dma.done.wait [#allocation15], 12416  }
  0xb3   :  { %5306 = vsyncadd [#allocation15], 4294954880 }
  0xb4   :  { %5307 = dma.done.wait [#allocation18], 32  }
  0xb5   :  { %5308 = vsyncadd [#allocation18], 4294967264  ;;  %v5323_v1 = vmov 0   ;;  %v4618_v2 = vld [vmem:[#allocation3 + $0x4] ss:$24 sps:$4 sm:$0xff]   ;;  %s5780_s3 = sld [smem:[#allocation25_spill]] }
  0xb6   :  { %327 = vmatprep.mubr.bf16.mxu0 %v5323_v1  ;;  %400 = vmatprep.mubr.bf16.mxu1 %v5323_v1  ;;  %v4620_v3 = vld [vmem:[#allocation3 + $0xc] ss:$24 sps:$4 sm:$0xff]   ;;  %v4622_v4 = vld [vmem:[#allocation3] ss:$24 sps:$4 sm:$0xff]   ;;  %v4626_v7 = vld [vmem:[#allocation3 + $0x3c] ss:$24 sps:$4 sm:$0xff]  }
  0xb7   :  { %295 = vmatprep.subr.bf16.mxu0 %v4618_v2  ;;  %v4623_v5 = vld [vmem:[#allocation3 + $0x8] ss:$24 sps:$4 sm:$0xff]   ;;  %368 = vmatprep.subr.bf16.mxu1 %v4620_v3  ;;  %v4624_v6 = vld [vmem:[#allocation3 + $0x34] ss:$24 sps:$4 sm:$0xff]   ;;  %v4629_v9 = vld [vmem:[#allocation3 + $0x38] ss:$24 sps:$4 sm:$0xff]  }
  0xb8   :  { %296 = vmatpush1.bf16.msra.mxu0 %v4622_v4  ;;  %369 = vmatpush1.bf16.msra.mxu1 %v4623_v5  ;;  %v4628_v8 = vld [vmem:[#allocation3 + $0x30] ss:$24 sps:$4 sm:$0xff]   ;;  %v4633_v11 = vld [vmem:[#allocation3 + $0x14] ss:$24 sps:$4 sm:$0xff]   ;;  %vm282_vm0 = vcmask 261120   ;;  %v5324_v18 = vmov 0.0  }
  0xb9   :  { %297 = vmatprep.subr.bf16.mxu0 %v4624_v6  ;;  %370 = vmatprep.subr.bf16.mxu1 %v4626_v7  ;;  %v4631_v12 = vld [vmem:[#allocation3 + $0x10] ss:$24 sps:$4 sm:$0xff]   ;;  %v4638_v13 = vld [vmem:[#allocation3 + $0x44] ss:$24 sps:$4 sm:$0xff]   ;;  %v4636_v14 = vld [vmem:[#allocation3 + $0x40] ss:$24 sps:$4 sm:$0xff]  }
  0xba   :  { %v4640_v19 = vld [vmem:[#allocation8] ss:$24 sps:$4 sm:$0xff]   ;;  %v4642_v20 = vld [vmem:[#allocation8 + $0x4] ss:$24 sps:$4 sm:$0xff]   ;;  %v4648_v21 = vld [vmem:[#allocation8 + $0x34] ss:$24 sps:$4 sm:$0xff]  }
  0xbb   :  { %v4630_v10 = vld [vmem:[%s5780_s3] sm:$0xff]   ;;  %v4634_v15 = vld [vmem:[%s5780_s3 + $0x8] sm:$0xff]   ;;  %v4635_v16 = vld [vmem:[%s5780_s3 + $0x10] sm:$0xff]   ;;  %vm526_vm1 = vcmask 523264   ;;  %vm2730_vm14 = vcmask 130048  }
  0xbc   :  { %298 = vmatpush1.bf16.msra.mxu0 %v4628_v8  ;;  %371 = vmatpush1.bf16.msra.mxu1 %v4629_v9  ;;  %v4639_v17 = vld [vmem:[%s5780_s3 + $0x18] sm:$0xff]   ;;  %v4646_v22 = vld [vmem:[#allocation8 + $0x30] ss:$24 sps:$4 sm:$0xff]   ;;  %v4660_v25 = vld [vmem:[#allocation8 + $0x94] ss:$24 sps:$4 sm:$0xff]  }
  0xbd   :  { %441 = vmatprep.subr.bf16.mxu0 %v4633_v11  ;;  %v4654_v23 = vld [vmem:[#allocation8 + $0x64] ss:$24 sps:$4 sm:$0xff]   ;;  %v4652_v24 = vld [vmem:[#allocation8 + $0x60] ss:$24 sps:$4 sm:$0xff]   ;;  %v4658_v26 = vld [vmem:[#allocation8 + $0x90] ss:$24 sps:$4 sm:$0xff]  }
  0xbe   :  { %v4666_v27 = vld [vmem:[#allocation8 + $0xc4] ss:$24 sps:$4 sm:$0xff]   ;;  %v4664_v28 = vld [vmem:[#allocation8 + $0xc0] ss:$24 sps:$4 sm:$0xff]   ;;  %v4672_v29 = vld [vmem:[#allocation8 + $0xf4] ss:$24 sps:$4 sm:$0xff]  }
  0xbf   :  { %4157 = vmatmul.mubr.msk.bf16.vlgmr.msra.gmra.mrb[0].mxu0 %vm282_vm0, %v4630_v10  ;;  %4161 = vmatmul.mubr.msk.bf16.vlgmr.msra.gmra.mrb[0].mxu1 %vm282_vm0, %v4630_v10  ;;  %v4670_v30 = vld [vmem:[#allocation8 + $0xf0] ss:$24 sps:$4 sm:$0xff]   ;;  %v4678_v31 = vld [vmem:[#allocation8 + $0x124] ss:$24 sps:$4 sm:$0xff]   ;;  %v4676_v32 = vld [vmem:[#allocation8 + $0x120] ss:$24 sps:$4 sm:$0xff]  }
  0xc0   :  { %337 = vmatprep.mubr.bf16.mxu0 %v5323_v1  ;;  %410 = vmatprep.mubr.bf16.mxu1 %v5323_v1  ;;  %v4684_v33 = vld [vmem:[#allocation8 + $0x154] ss:$24 sps:$4 sm:$0xff]   ;;  %v4682_v34 = vld [vmem:[#allocation8 + $0x150] ss:$24 sps:$4 sm:$0xff]   ;;  %v4690_v35 = vld [vmem:[#allocation8 + $0x184] ss:$24 sps:$4 sm:$0xff]  }
  0xc1   :  { %442 = vmatpush1.bf16.msra.mxu0 %v4631_v12  ;;  %v4688_v36 = vld [vmem:[#allocation8 + $0x180] ss:$24 sps:$4 sm:$0xff]   ;;  %v4696_v37 = vld [vmem:[#allocation8 + $0x1b4] ss:$24 sps:$4 sm:$0xff]   ;;  %v4694_v38 = vld [vmem:[#allocation8 + $0x1b0] ss:$24 sps:$4 sm:$0xff]  }
  0xc2   :  { %443 = vmatprep.subr.bf16.mxu0 %v4638_v13  ;;  %v4702_v39 = vld [vmem:[#allocation8 + $0x1e4] ss:$24 sps:$4 sm:$0xff]   ;;  %v4700_v40 = vld [vmem:[#allocation8 + $0x1e0] ss:$24 sps:$4 sm:$0xff]   ;;  %v4708_v41 = vld [vmem:[#allocation8 + $0x214] ss:$24 sps:$4 sm:$0xff]  }
  0xc3   :  { %v4706_v42 = vld [vmem:[#allocation8 + $0x210] ss:$24 sps:$4 sm:$0xff]  }
  0xc5   :  { %444 = vmatpush1.bf16.msra.mxu0 %v4636_v14 }
  0xc6   :  { %1522 = vmatprep.subr.bf16.mxu0 %v4642_v20 }
  0xc7   :  { %4158 = vmatmul.mubr.msk.bf16.gmra.mrb[4].mxu0 %vm282_vm0, %v4634_v15  ;;  %4162 = vmatmul.mubr.msk.bf16.gmra.mrb[4].mxu1 %vm282_vm0, %v4634_v15 }
  0xc8   :  { %347 = vmatprep.mubr.bf16.mxu0 %v5323_v1  ;;  %420 = vmatprep.mubr.bf16.mxu1 %v5323_v1 }
  0xcf   :  { %4159 = vmatmul.mubr.msk.bf16.gmra.mrb[8].mxu0 %vm282_vm0, %v4635_v16  ;;  %4163 = vmatmul.mubr.msk.bf16.gmra.mrb[8].mxu1 %vm282_vm0, %v4635_v16 }
  0xd0   :  { %357 = vmatprep.mubr.bf16.mxu0 %v5323_v1  ;;  %430 = vmatprep.mubr.bf16.mxu1 %v5323_v1 }
  0xd7   :  { %4160 = vmatmul.mubr.msk.bf16.gmra.mrb[12].mxu0 %vm282_vm0, %v4639_v17  ;;  %4164 = vmatmul.mubr.msk.bf16.gmra.mrb[12].mxu1 %vm282_vm0, %v4639_v17 }
  0xd8   :  { %473 = vmatprep.mubr.bf16.mxu0 %v5323_v1  ;;  %603 = vmatprep.mubr.f32.mxu1 %v5324_v18 }
  0xdf   :  { %4165 = vmatmul.mubr.msk.bf16.vlgmr.msra.gmra.mrb[16].mxu0 %vm282_vm0, %v4630_v10 }
  0xe0   :  { %483 = vmatprep.mubr.bf16.mxu0 %v5323_v1  ;;  %1523 = vmatpush1.bf16.msra.mxu0 %v4640_v19 }
  0xe1   :  { %1524 = vmatprep.subr.bf16.mxu0 %v4648_v21 }
  0xe4   :  { %1525 = vmatpush1.bf16.msra.mxu0 %v4646_v22 }
  0xe5   :  { %1526 = vmatprep.subr.bf16.mxu0 %v4654_v23 }
  0xe7   :  { %4166 = vmatmul.mubr.msk.bf16.gmra.mrb[20].mxu0 %vm282_vm0, %v4634_v15 }
  0xe8   :  { %493 = vmatprep.mubr.bf16.mxu0 %v5323_v1  ;;  %1527 = vmatpush1.bf16.msra.mxu0 %v4652_v24 }
  0xe9   :  { %1528 = vmatprep.subr.bf16.mxu0 %v4660_v25 }
  0xec   :  { %1529 = vmatpush1.bf16.msra.mxu0 %v4658_v26 }
  0xed   :  { %1530 = vmatprep.subr.bf16.mxu0 %v4666_v27 }
  0xef   :  { %4167 = vmatmul.mubr.msk.bf16.gmra.mrb[24].mxu0 %vm282_vm0, %v4635_v16 }
  0xf0   :  { %503 = vmatprep.mubr.bf16.mxu0 %v5323_v1  ;;  %1531 = vmatpush1.bf16.msra.mxu0 %v4664_v28  ;;  %v518_v28 = vld [vmem:[%s5762_s1 + $0x20] sm:$0xff] }
  0xf1   :  { %1532 = vmatprep.subr.bf16.mxu0 %v4672_v29 }
  0xf4   :  { %1533 = vmatpush1.bf16.msra.mxu0 %v4670_v30 }
  0xf5   :  { %1534 = vmatprep.subr.bf16.mxu0 %v4678_v31 }
  0xf7   :  { %4168 = vmatmul.mubr.msk.bf16.gmra.mrb[28].mxu0 %vm282_vm0, %v4639_v17 }
  0xf8   :  { %1535 = vmatpush1.bf16.msra.mxu0 %v4676_v32 }
  0xf9   :  { %1536 = vmatprep.subr.bf16.mxu0 %v4684_v33 }
  0xfc   :  { %1537 = vmatpush1.bf16.msra.mxu0 %v4682_v34  ;;  %v519_v34 = vld [vmem:[%s5762_s1 + $0x28] sm:$0xff] }
  0xfd   :  { %1538 = vmatprep.subr.bf16.mxu0 %v4690_v35 }
 0x100   :  { %1539 = vmatpush1.bf16.msra.mxu0 %v4688_v36  ;;  %v520_v36 = vld [vmem:[%s5762_s1 + $0x30] sm:$0xff] }
 0x101   :  { %1540 = vmatprep.subr.bf16.mxu0 %v4696_v37 }
 0x104   :  { %1541 = vmatpush1.bf16.msra.mxu0 %v4694_v38 }
 0x105   :  { %1542 = vmatprep.subr.bf16.mxu0 %v4702_v39 }
 0x108   :  { %1543 = vmatpush1.bf16.msra.mxu0 %v4700_v40 }
 0x109   :  { %1544 = vmatprep.subr.bf16.mxu0 %v4708_v41 }
 0x10c   :  { %1545 = vmatpush1.bf16.msra.mxu0 %v4706_v42  ;;  %v521_v42 = vld [vmem:[%s5762_s1 + $0x38] sm:$0xff] }
 0x192   :  { %v5570_v43 = vpop.f32.mrb[0].mxu0  ;;  %v402_v44 = vpop.f32.mrb[0].mxu1 }
 0x193   :  { %v331_v45 = vpop.f32.mrb[1].mxu0  ;;  %v404_v46 = vpop.f32.mrb[1].mxu1 }
 0x194   :  { %v333_v47 = vpop.f32.mrb[2].mxu0  ;;  %v406_v48 = vpop.f32.mrb[2].mxu1 }
 0x195   :  { %v4504_v49 = vpack.c.bf16 %v333_v47, %v5570_v43  ;;  %v4488_v50 = vpack.c.bf16 %v406_v48, %v402_v44  ;;  %v335_v51 = vpop.f32.mrb[3].mxu0  ;;  %v408_v52 = vpop.f32.mrb[3].mxu1  ;;  %v514_v44 = vld [vmem:[%s5762_s1] sm:$0xff] }
 0x196   :  { %v4502_v53 = vpack.c.bf16 %v335_v51, %v331_v45  ;;  %v4486_v54 = vpack.c.bf16 %v408_v52, %v404_v46  ;;  %v516_v52 = vld [vmem:[%s5762_s1 + $0x10] sm:$0xff] }
 0x198   :  { %4487 = vmatprep.subr.bf16.mxu1 %v4486_v54 }
 0x199   :  { %4489 = vmatpush1.bf16.msra.mxu1 %v4488_v50  ;;  %v515_v50 = vld [vmem:[%s5762_s1 + $0x8] sm:$0xff] }
 0x19a   :  { %v339_v55 = vpop.f32.mrb[4].mxu0  ;;  %v412_v56 = vpop.f32.mrb[4].mxu1 }
 0x19b   :  { %v341_v57 = vpop.f32.mrb[5].mxu0  ;;  %v414_v58 = vpop.f32.mrb[5].mxu1 }
 0x19c   :  { %v343_v59 = vpop.f32.mrb[6].mxu0  ;;  %v416_v60 = vpop.f32.mrb[6].mxu1 }
 0x19d   :  { %v4508_v61 = vpack.c.bf16 %v343_v59, %v339_v55  ;;  %v4492_v62 = vpack.c.bf16 %v416_v60, %v412_v56  ;;  %v345_v63 = vpop.f32.mrb[7].mxu0  ;;  %v418_v0 = vpop.f32.mrb[7].mxu1  ;;  %v4645_v60 = vld [vmem:[#allocation8 + $0xc] ss:$24 sps:$4 sm:$0xff]  }
 0x19e   :  { %v4506_v1 = vpack.c.bf16 %v345_v63, %v341_v57  ;;  %v4490_v2 = vpack.c.bf16 %v418_v0, %v414_v58  ;;  %v517_v58 = vld [vmem:[%s5762_s1 + $0x18] sm:$0xff]  ;;  %v523_v0 = vld [vmem:[%s5762_s1 + $0x48] sm:$0xff] }
 0x19f   :  { %v4651_v63 = vld [vmem:[#allocation8 + $0x3c] ss:$24 sps:$4 sm:$0xff]  }
 0x1a0   :  { %4491 = vmatprep.subr.bf16.mxu1 %v4490_v2  ;;  %v4657_v2 = vld [vmem:[#allocation8 + $0x6c] ss:$24 sps:$4 sm:$0xff]  }
 0x1a1   :  { %4493 = vmatpush1.bf16.msra.mxu1 %v4492_v62  ;;  %v4643_v62 = vld [vmem:[#allocation8 + $0x8] ss:$24 sps:$4 sm:$0xff]  }
 0x1a2   :  { %v349_v3 = vpop.f32.mrb[8].mxu0  ;;  %v422_v4 = vpop.f32.mrb[8].mxu1 }
 0x1a3   :  { %v351_v5 = vpop.f32.mrb[9].mxu0  ;;  %v424_v6 = vpop.f32.mrb[9].mxu1 }
 0x1a4   :  { %v353_v7 = vpop.f32.mrb[10].mxu0  ;;  %v426_v8 = vpop.f32.mrb[10].mxu1 }
 0x1a5   :  { %v4512_v9 = vpack.c.bf16 %v353_v7, %v349_v3  ;;  %v4496_v10 = vpack.c.bf16 %v426_v8, %v422_v4  ;;  %v355_v11 = vpop.f32.mrb[11].mxu0  ;;  %v428_v12 = vpop.f32.mrb[11].mxu1  ;;  %v524_v3 = vld [vmem:[%s5762_s1 + $0x50] sm:$0xff]  ;;  %v4655_v4 = vld [vmem:[#allocation8 + $0x68] ss:$24 sps:$4 sm:$0xff]  }
 0x1a6   :  { %v4510_v13 = vpack.c.bf16 %v355_v11, %v351_v5  ;;  %v4494_v14 = vpack.c.bf16 %v428_v12, %v424_v6  ;;  %v4663_v5 = vld [vmem:[#allocation8 + $0x9c] ss:$24 sps:$4 sm:$0xff]   ;;  %v4661_v7 = vld [vmem:[#allocation8 + $0x98] ss:$24 sps:$4 sm:$0xff]   ;;  %v4669_v8 = vld [vmem:[#allocation8 + $0xcc] ss:$24 sps:$4 sm:$0xff]  }
 0x1a7   :  { %v525_v6 = vld [vmem:[%s5762_s1 + $0x58] sm:$0xff]  ;;  %v4673_v11 = vld [vmem:[#allocation8 + $0xf8] ss:$24 sps:$4 sm:$0xff]  }
 0x1a8   :  { %4495 = vmatprep.subr.bf16.mxu1 %v4494_v14  ;;  %v4681_v12 = vld [vmem:[#allocation8 + $0x12c] ss:$24 sps:$4 sm:$0xff]   ;;  %v4687_v14 = vld [vmem:[#allocation8 + $0x15c] ss:$24 sps:$4 sm:$0xff]  }
 0x1a9   :  { %4497 = vmatpush1.bf16.msra.mxu1 %v4496_v10  ;;  %v4675_v10 = vld [vmem:[#allocation8 + $0xfc] ss:$24 sps:$4 sm:$0xff]  }
 0x1aa   :  { %v359_v15 = vpop.f32.mrb[12].mxu0  ;;  %v432_v16 = vpop.f32.mrb[12].mxu1 }
 0x1ab   :  { %v361_v17 = vpop.f32.mrb[13].mxu0  ;;  %v434_v19 = vpop.f32.mrb[13].mxu1 }
 0x1ac   :  { %v363_v20 = vpop.f32.mrb[14].mxu0  ;;  %v436_v21 = vpop.f32.mrb[14].mxu1 }
 0x1ad   :  { %v4516_v22 = vpack.c.bf16 %v363_v20, %v359_v15  ;;  %v4500_v23 = vpack.c.bf16 %v436_v21, %v432_v16  ;;  %v365_v24 = vpop.f32.mrb[15].mxu0  ;;  %v438_v25 = vpop.f32.mrb[15].mxu1  ;;  %v4685_v15 = vld [vmem:[#allocation8 + $0x158] ss:$24 sps:$4 sm:$0xff]   ;;  %v4693_v16 = vld [vmem:[#allocation8 + $0x18c] ss:$24 sps:$4 sm:$0xff]  }
 0x1ae   :  { %v4514_v26 = vpack.c.bf16 %v365_v24, %v361_v17  ;;  %v4498_v27 = vpack.c.bf16 %v438_v25, %v434_v19  ;;  %v4691_v17 = vld [vmem:[#allocation8 + $0x188] ss:$24 sps:$4 sm:$0xff]   ;;  %v4699_v19 = vld [vmem:[#allocation8 + $0x1bc] ss:$24 sps:$4 sm:$0xff]   ;;  %v4697_v20 = vld [vmem:[#allocation8 + $0x1b8] ss:$24 sps:$4 sm:$0xff]  }
 0x1af   :  { %v4705_v21 = vld [vmem:[#allocation8 + $0x1ec] ss:$24 sps:$4 sm:$0xff]   ;;  %v4709_v24 = vld [vmem:[#allocation8 + $0x218] ss:$24 sps:$4 sm:$0xff]  }
 0x1b0   :  { %4499 = vmatprep.subr.bf16.mxu1 %v4498_v27  ;;  %v4714_v25 = vld [vmem:[#allocation8 + $0x244] ss:$24 sps:$4 sm:$0xff]  }
 0x1b1   :  { %4501 = vmatpush1.bf16.msra.mxu1 %v4500_v23  ;;  %v4711_v23 = vld [vmem:[#allocation8 + $0x21c] ss:$24 sps:$4 sm:$0xff]   ;;  %v4717_v27 = vld [vmem:[#allocation8 + $0x24c] ss:$24 sps:$4 sm:$0xff]   ;;  %1546 = vmatprep.subr.bf16.mxu0 %v4714_v25 }
 0x1b2   :  { %v475_v29 = vpop.f32.mrb[16].mxu0  ;;  %4503 = vmatprep.subr.bf16.mxu1 %v4502_v53 }
 0x1b3   :  { %v477_v30 = vpop.f32.mrb[17].mxu0 }
 0x1b4   :  { %v479_v31 = vpop.f32.mrb[18].mxu0  ;;  %4169 = vmatmul.mubr.msk.f32.vlgmr.msra.gmra.mrb[16].mxu1 %vm526_vm1, %v518_v28  ;;  %v4715_v28 = vld [vmem:[#allocation8 + $0x248] ss:$24 sps:$4 sm:$0xff]  }
 0x1b5   :  { %v4520_v32 = vpack.c.bf16 %v479_v31, %v475_v29  ;;  %v481_v33 = vpop.f32.mrb[19].mxu0  ;;  %4505 = vmatpush1.bf16.msra.mxu1 %v4504_v49  ;;  %609 = vmatprep.mubr.f32.mxu1 %v5324_v18  ;;  %v4720_v29 = vld [vmem:[#allocation8 + $0x274] ss:$24 sps:$4 sm:$0xff]  }
 0x1b6   :  { %v4518_v35 = vpack.c.bf16 %v481_v33, %v477_v30  ;;  %4507 = vmatprep.subr.bf16.mxu1 %v4506_v1  ;;  %v4649_v1 = vld [vmem:[#allocation8 + $0x38] ss:$24 sps:$4 sm:$0xff]   ;;  %v4723_v31 = vld [vmem:[#allocation8 + $0x27c] ss:$24 sps:$4 sm:$0xff]  }
 0x1b7   :  { %v4718_v30 = vld [vmem:[#allocation8 + $0x270] ss:$24 sps:$4 sm:$0xff]   ;;  %v4726_v33 = vld [vmem:[#allocation8 + $0x2a4] ss:$24 sps:$4 sm:$0xff]  }
 0x1b8   :  { %4170 = vmatmul.mubr.msk.f32.gmra.mrb[18].mxu1 %vm526_vm1, %v519_v34  ;;  %v4724_v34 = vld [vmem:[#allocation8 + $0x2a0] ss:$24 sps:$4 sm:$0xff]  }
 0x1b9   :  { %4509 = vmatpush1.bf16.msra.mxu1 %v4508_v61  ;;  %615 = vmatprep.mubr.f32.mxu1 %v5324_v18  ;;  %v522_v61 = vld [vmem:[%s5762_s1 + $0x40] sm:$0xff] }
 0x1ba   :  { %v485_v37 = vpop.f32.mrb[20].mxu0  ;;  %4511 = vmatprep.subr.bf16.mxu1 %v4510_v13  ;;  %v4679_v13 = vld [vmem:[#allocation8 + $0x128] ss:$24 sps:$4 sm:$0xff]  }
 0x1bb   :  { %v487_v38 = vpop.f32.mrb[21].mxu0 }
 0x1bc   :  { %v489_v39 = vpop.f32.mrb[22].mxu0  ;;  %4171 = vmatmul.mubr.msk.f32.gmra.mrb[20].mxu1 %vm526_vm1, %v520_v36  ;;  %v4727_v36 = vld [vmem:[#allocation8 + $0x2a8] ss:$24 sps:$4 sm:$0xff]  }
 0x1bd   :  { %v4524_v40 = vpack.c.bf16 %v489_v39, %v485_v37  ;;  %v491_v41 = vpop.f32.mrb[23].mxu0  ;;  %4513 = vmatpush1.bf16.msra.mxu1 %v4512_v9  ;;  %621 = vmatprep.mubr.f32.mxu1 %v5324_v18  ;;  %v4667_v9 = vld [vmem:[#allocation8 + $0xc8] ss:$24 sps:$4 sm:$0xff]   ;;  %v4732_v37 = vld [vmem:[#allocation8 + $0x2d4] ss:$24 sps:$4 sm:$0xff]  }
 0x1be   :  { %v4522_v43 = vpack.c.bf16 %v491_v41, %v487_v38  ;;  %4515 = vmatprep.subr.bf16.mxu1 %v4514_v26  ;;  %v4712_v26 = vld [vmem:[#allocation8 + $0x240] ss:$24 sps:$4 sm:$0xff]   ;;  %v4730_v38 = vld [vmem:[#allocation8 + $0x2d0] ss:$24 sps:$4 sm:$0xff]   ;;  %v4735_v39 = vld [vmem:[#allocation8 + $0x2dc] ss:$24 sps:$4 sm:$0xff]  }
 0x1bf   :  { %1547 = vmatpush1.bf16.msra.mxu0 %v4712_v26  ;;  %v4738_v41 = vld [vmem:[#allocation8 + $0x14] ss:$24 sps:$4 sm:$0xff]  }
 0x1c0   :  { %4172 = vmatmul.mubr.msk.f32.gmra.mrb[22].mxu1 %vm526_vm1, %v521_v42  ;;  %1548 = vmatprep.subr.bf16.mxu0 %v4720_v29  ;;  %v840_v42 = vlaneseq }
 0x1c1   :  { %4517 = vmatpush1.bf16.msra.mxu1 %v4516_v22  ;;  %704 = vmatprep.mubr.f32.mxu1 %v5324_v18  ;;  %v4703_v22 = vld [vmem:[#allocation8 + $0x1e8] ss:$24 sps:$4 sm:$0xff]  }
 0x1c2   :  { %v495_v45 = vpop.f32.mrb[24].mxu0  ;;  %4519 = vmatprep.subr.bf16.mxu1 %v4518_v35  ;;  %v4729_v35 = vld [vmem:[#allocation8 + $0x2ac] ss:$24 sps:$4 sm:$0xff]  }
 0x1c3   :  { %v497_v46 = vpop.f32.mrb[25].mxu0  ;;  %1549 = vmatpush1.bf16.msra.mxu0 %v4718_v30 }
 0x1c4   :  { %v499_v47 = vpop.f32.mrb[26].mxu0  ;;  %4173 = vmatmul.mubr.msk.f32.vlgmr.msra.gmra.mrb[16].mxu1 %vm526_vm1, %v514_v44  ;;  %1550 = vmatprep.subr.bf16.mxu0 %v4726_v33 }
 0x1c5   :  { %v4528_v48 = vpack.c.bf16 %v499_v47, %v495_v45  ;;  %v501_v49 = vpop.f32.mrb[27].mxu0  ;;  %4521 = vmatpush1.bf16.msra.mxu1 %v4520_v32  ;;  %710 = vmatprep.mubr.f32.mxu1 %v5324_v18  ;;  %v4721_v32 = vld [vmem:[#allocation8 + $0x278] ss:$24 sps:$4 sm:$0xff]   ;;  %v838_v45 = vld [vmem:[#allocation5] sm:$0x77] }
 0x1c6   :  { %v4526_v51 = vpack.c.bf16 %v501_v49, %v497_v46  ;;  %4523 = vmatprep.subr.bf16.mxu1 %v4522_v43  ;;  %v841_v43 = vshrl.u32 %v840_v42, 7  ;;  %v4741_v42 = vld [vmem:[#allocation8 + $0x44] ss:$24 sps:$4 sm:$0xff]  }
 0x1c7   :  { %1551 = vmatpush1.bf16.msra.mxu0 %v4724_v34 }
 0x1c8   :  { %4174 = vmatmul.mubr.msk.f32.gmra.mrb[18].mxu1 %vm526_vm1, %v515_v50  ;;  %1552 = vmatprep.subr.bf16.mxu0 %v4732_v37  ;;  %v5632_v44 = vsub.s32 0, %v841_v43  ;;  %v5634_v46 = vsub.s32 4, %v841_v43  ;;  %v5638_v49 = vsub.s32 1, %v841_v43 }
 0x1c9   :  { %4525 = vmatpush1.bf16.msra.mxu1 %v4524_v40  ;;  %716 = vmatprep.mubr.f32.mxu1 %v5324_v18  ;;  %v4733_v40 = vld [vmem:[#allocation8 + $0x2d8] ss:$24 sps:$4 sm:$0xff]  }
 0x1ca   :  { %v505_v53 = vpop.f32.mrb[28].mxu0  ;;  %4527 = vmatprep.subr.bf16.mxu1 %v4526_v51  ;;  %v843_v47 = vrot.slane %v838_v45, %v5632_v44  ;;  %v5641_v51 = vsub.s32 5, %v841_v43 }
 0x1cb   :  { %v507_v54 = vpop.f32.mrb[29].mxu0  ;;  %1553 = vmatpush1.bf16.msra.mxu0 %v4730_v38 }
 0x1cc   :  { %v509_v55 = vpop.f32.mrb[30].mxu0  ;;  %4175 = vmatmul.mubr.msk.f32.gmra.mrb[20].mxu1 %vm526_vm1, %v516_v52  ;;  %1628 = vmatprep.subr.bf16.mxu0 %v4738_v41  ;;  %v853_v50 = vrot.slane %v843_v47, %v5632_v44 }
 0x1cd   :  { %v4532_v56 = vpack.c.bf16 %v509_v55, %v505_v53  ;;  %v511_v57 = vpop.f32.mrb[31].mxu0  ;;  %4529 = vmatpush1.bf16.msra.mxu1 %v4528_v48  ;;  %722 = vmatprep.mubr.f32.mxu1 %v5324_v18  ;;  %v847_v48 = vrot.slane %v838_v45, %v5634_v46  ;;  %v5645_v55 = vsub.s32 2, %v841_v43 }
 0x1ce   :  { %v4530_v59 = vpack.c.bf16 %v511_v57, %v507_v54  ;;  %v893_v54 = vrot.slane %v838_v45, %v5638_v49 }
 0x1cf   :  { %v857_v52 = vrot.slane %v847_v48, %v5632_v44 }
 0x1d0   :  { %4176 = vmatmul.mubr.msk.f32.gmra.mrb[22].mxu1 %vm526_vm1, %v517_v58  ;;  %4531 = vmatprep.subr.bf16.mxu1 %v4530_v59  ;;  %v897_v58 = vrot.slane %v838_v45, %v5641_v51  ;;  %v5648_v59 = vsub.s32 6, %v841_v43 }
 0x1d1   :  { %4533 = vmatpush1.bf16.msra.mxu1 %v4532_v56  ;;  %805 = vmatprep.mubr.f32.mxu1 %v5324_v18 }
 0x1d2   :  { %1575 = vmatprep.subr.bf16.mxu1 %v4645_v60 }
 0x1d4   :  { %4177 = vmatmul.mubr.msk.f32.vlgmr.msra.gmra.mrb[16].mxu1 %vm526_vm1, %v522_v61 }
 0x1d5   :  { %811 = vmatprep.mubr.f32.mxu1 %v5324_v18  ;;  %1576 = vmatpush1.bf16.msra.mxu1 %v4643_v62  ;;  %v903_v62 = vrot.slane %v893_v54, %v5638_v49 }
 0x1d6   :  { %1577 = vmatprep.subr.bf16.mxu1 %v4651_v63  ;;  %v919_v63 = vrot.slane %v838_v45, %v5645_v55 }
 0x1d8   :  { %4178 = vmatmul.mubr.msk.f32.gmra.mrb[18].mxu1 %vm526_vm1, %v523_v0 }
 0x1d9   :  { %817 = vmatprep.mubr.f32.mxu1 %v5324_v18  ;;  %1578 = vmatpush1.bf16.msra.mxu1 %v4649_v1 }
 0x1da   :  { %1579 = vmatprep.subr.bf16.mxu1 %v4657_v2 }
 0x1dc   :  { %4179 = vmatmul.mubr.msk.f32.gmra.mrb[20].mxu1 %vm526_vm1, %v524_v3  ;;  %v907_v3 = vrot.slane %v897_v58, %v5638_v49 }
 0x1dd   :  { %823 = vmatprep.mubr.f32.mxu1 %v5324_v18  ;;  %1580 = vmatpush1.bf16.msra.mxu1 %v4655_v4 }
 0x1de   :  { %1581 = vmatprep.subr.bf16.mxu1 %v4663_v5 }
 0x1e0   :  { %4180 = vmatmul.mubr.msk.f32.gmra.mrb[22].mxu1 %vm526_vm1, %v525_v6  ;;  %v923_v6 = vrot.slane %v838_v45, %v5648_v59  ;;  %vm3727_vm1 = vcmask 64512  }
 0x1e1   :  { %1582 = vmatpush1.bf16.msra.mxu1 %v4661_v7 }
 0x1e2   :  { %1583 = vmatprep.subr.bf16.mxu1 %v4669_v8 }
 0x1e5   :  { %1584 = vmatpush1.bf16.msra.mxu1 %v4667_v9 }
 0x1e6   :  { %1585 = vmatprep.subr.bf16.mxu1 %v4675_v10 }
 0x1e9   :  { %1586 = vmatpush1.bf16.msra.mxu1 %v4673_v11  ;;  %v929_v11 = vrot.slane %v919_v63, %v5645_v55  ;;  %v4742_v63 = vld [vmem:[#allocation8 + $0x70] ss:$24 sps:$4 sm:$0xff]  }
 0x1ea   :  { %1587 = vmatprep.subr.bf16.mxu1 %v4681_v12 }
 0x1ed   :  { %1588 = vmatpush1.bf16.msra.mxu1 %v4679_v13 }
 0x1ee   :  { %1589 = vmatprep.subr.bf16.mxu1 %v4687_v14 }
 0x1f1   :  { %1590 = vmatpush1.bf16.msra.mxu1 %v4685_v15 }
 0x1f2   :  { %1591 = vmatprep.subr.bf16.mxu1 %v4693_v16 }
 0x1f5   :  { %1592 = vmatpush1.bf16.msra.mxu1 %v4691_v17 }
 0x1f6   :  { %1593 = vmatprep.subr.bf16.mxu1 %v4699_v19  ;;  %v933_v19 = vrot.slane %v923_v6, %v5645_v55  ;;  %v4754_v6 = vld [vmem:[#allocation8 + $0x130] ss:$24 sps:$4 sm:$0xff]  }
 0x1f9   :  { %1594 = vmatpush1.bf16.msra.mxu1 %v4697_v20 }
 0x1fa   :  { %1595 = vmatprep.subr.bf16.mxu1 %v4705_v21 }
 0x1fd   :  { %1596 = vmatpush1.bf16.msra.mxu1 %v4703_v22 }
 0x1fe   :  { %1597 = vmatprep.subr.bf16.mxu1 %v4711_v23 }
 0x201   :  { %1598 = vmatpush1.bf16.msra.mxu1 %v4709_v24 }
 0x202   :  { %1599 = vmatprep.subr.bf16.mxu1 %v4717_v27 }
 0x205   :  { %1600 = vmatpush1.bf16.msra.mxu1 %v4715_v28 }
 0x206   :  { %1601 = vmatprep.subr.bf16.mxu1 %v4723_v31 }
 0x209   :  { %1602 = vmatpush1.bf16.msra.mxu1 %v4721_v32 }
 0x20a   :  { %1603 = vmatprep.subr.bf16.mxu1 %v4729_v35 }
 0x20d   :  { %1604 = vmatpush1.bf16.msra.mxu1 %v4727_v36 }
 0x20e   :  { %1605 = vmatprep.subr.bf16.mxu1 %v4735_v39  ;;  %v4736_v39 = vld [vmem:[#allocation8 + $0x10] ss:$24 sps:$4 sm:$0xff]  }
 0x211   :  { %1606 = vmatpush1.bf16.msra.mxu1 %v4733_v40 }
 0x2a7   :  { %v807_v53 = vpop.f32.mrb[16].mxu1 }
 0x2a8   :  { %v858_v56 = vadd.f32 %v853_v50, %v807_v53  ;;  %v809_v57 = vpop.f32.mrb[17].mxu1  ;;  %v4744_v53 = vld [vmem:[#allocation8 + $0x74] ss:$24 sps:$4 sm:$0xff]  }
 0x2a9   :  { %v859_v60 = vadd.f32 %v857_v52, %v809_v57 }
 0x2aa   :  { %vm866_vm2 = vcmp.gt.f32.partialorder %v858_v56, 0.0  ;;  %v874_v61 = vmul.f32 0.2, %v858_v56 }
 0x2ab   :  { %vm867_vm3 = vcmp.gt.f32.partialorder %v859_v60, 0.0  ;;  %v875_v0 = vmul.f32 0.2, %v859_v60  ;;  %v813_v1 = vpop.f32.mrb[18].mxu1 }
 0x2ac   :  { %v882_v2 = vsel %vm866_vm2, %v858_v56, %v874_v61  ;;  %v860_v4 = vadd.f32 %v853_v50, %v813_v1  ;;  %v815_v5 = vpop.f32.mrb[19].mxu1  ;;  %v4750_v1 = vld [vmem:[#allocation8 + $0xd4] ss:$24 sps:$4 sm:$0xff]  }
 0x2ad   :  { %v883_v7 = vsel %vm867_vm3, %v859_v60, %v875_v0  ;;  %v861_v8 = vadd.f32 %v857_v52, %v815_v5  ;;  %v908_v10 = vmul.f32 %v903_v62, %v882_v2  ;;  %v4745_v0 = vld [vmem:[#allocation8 + $0xa0] ss:$24 sps:$4 sm:$0xff]   ;;  %v4748_v2 = vld [vmem:[#allocation8 + $0xd0] ss:$24 sps:$4 sm:$0xff]   ;;  %v4756_v5 = vld [vmem:[#allocation8 + $0x134] ss:$24 sps:$4 sm:$0xff]  }
 0x2ae   :  { %vm868_vm4 = vcmp.gt.f32.partialorder %v860_v4, 0.0  ;;  %v876_v9 = vmul.f32 0.2, %v860_v4  ;;  %v909_v14 = vmul.f32 %v907_v3, %v883_v7  ;;  %v4759_v7 = vld [vmem:[#allocation8 + $0x164] ss:$24 sps:$4 sm:$0xff]  }
 0x2af   :  { %vm869_vm5 = vcmp.gt.f32.partialorder %v861_v8, 0.0  ;;  %v877_v12 = vmul.f32 0.2, %v861_v8  ;;  %v819_v13 = vpop.f32.mrb[20].mxu1  ;;  %v934_v25 = vadd.f32 %v929_v11, %v908_v10  ;;  %v4760_v10 = vld [vmem:[#allocation8 + $0x190] ss:$24 sps:$4 sm:$0xff]  }
 0x2b0   :  { %v884_v15 = vsel %vm868_vm4, %v860_v4, %v876_v9  ;;  %v862_v16 = vadd.f32 %v853_v50, %v819_v13  ;;  %v821_v17 = vpop.f32.mrb[21].mxu1  ;;  %v935_v32 = vadd.f32 %v933_v19, %v909_v14  ;;  %v4751_v4 = vld [vmem:[#allocation8 + $0x100] ss:$24 sps:$4 sm:$0xff]   ;;  %v4762_v9 = vld [vmem:[#allocation8 + $0x194] ss:$24 sps:$4 sm:$0xff]   ;;  %vm4031_vm4 = vcmask 1043456  }
 0x2b1   :  { %v910_v20 = vmul.f32 %v903_v62, %v884_v15  ;;  %v885_v21 = vsel %vm869_vm5, %v861_v8, %v877_v12  ;;  %v863_v22 = vadd.f32 %v857_v52, %v821_v17  ;;  %v4757_v8 = vld [vmem:[#allocation8 + $0x160] ss:$24 sps:$4 sm:$0xff]   ;;  %v4768_v13 = vld [vmem:[#allocation8 + $0x1f4] ss:$24 sps:$4 sm:$0xff]   ;;  %v4766_v14 = vld [vmem:[#allocation8 + $0x1f0] ss:$24 sps:$4 sm:$0xff]  }
 0x2b2   :  { %v911_v23 = vmul.f32 %v907_v3, %v885_v21  ;;  %vm870_vm6 = vcmp.gt.f32.partialorder %v862_v16, 0.0  ;;  %v878_v24 = vmul.f32 0.2, %v862_v16  ;;  %v4763_v12 = vld [vmem:[#allocation8 + $0x1c0] ss:$24 sps:$4 sm:$0xff]   ;;  %vm4027_vm5 = vcmask 31744  }
 0x2b3   :  { %v936_v26 = vadd.f32 %v929_v11, %v910_v20  ;;  %vm871_vm7 = vcmp.gt.f32.partialorder %v863_v22, 0.0  ;;  %v879_v27 = vmul.f32 0.2, %v863_v22  ;;  %v825_v28 = vpop.f32.mrb[22].mxu1  ;;  %v4771_v15 = vld [vmem:[#allocation8 + $0x224] ss:$24 sps:$4 sm:$0xff]  }
 0x2b4   :  { %v886_v29 = vsel %vm870_vm6, %v862_v16, %v878_v24  ;;  %v864_v30 = vadd.f32 %v853_v50, %v825_v28  ;;  %v827_v31 = vpop.f32.mrb[23].mxu1  ;;  %v937_v33 = vadd.f32 %v933_v19, %v911_v23  ;;  %v4769_v16 = vld [vmem:[#allocation8 + $0x220] ss:$24 sps:$4 sm:$0xff]   ;;  %v4774_v17 = vld [vmem:[#allocation8 + $0x254] ss:$24 sps:$4 sm:$0xff]   ;;  %vm4109_vm6 = vcmask 1041408  }
 0x2b5   :  { %v5656_v34 = vpack.c.bf16 %v936_v26, %v934_v25  ;;  %v887_v35 = vsel %vm871_vm7, %v863_v22, %v879_v27  ;;  %v865_v36 = vadd.f32 %v857_v52, %v827_v31  ;;  %v912_v40 = vmul.f32 %v903_v62, %v886_v29  ;;  %v4739_v52 = vld [vmem:[#allocation8 + $0x40] ss:$24 sps:$4 sm:$0xff]   ;;  %v4777_v20 = vld [vmem:[#allocation8 + $0x284] ss:$24 sps:$4 sm:$0xff]   ;;  %v4780_v22 = vld [vmem:[#allocation8 + $0x2b4] ss:$24 sps:$4 sm:$0xff]  }
 0x2b6   :  { %vm872_vm8 = vcmp.gt.f32.partialorder %v864_v30, 0.0  ;;  %v880_v37 = vmul.f32 0.2, %v864_v30  ;;  %v943_v38 = vpack.c.bf16 %v937_v33, %v935_v32  ;;  %v913_v43 = vmul.f32 %v907_v3, %v887_v35  ;;  %v4775_v21 = vld [vmem:[#allocation8 + $0x280] ss:$24 sps:$4 sm:$0xff]  }
 0x2b7   :  { %vm873_vm9 = vcmp.gt.f32.partialorder %v865_v36, 0.0  ;;  %v881_v41 = vmul.f32 0.2, %v865_v36  ;;  %v938_v54 = vadd.f32 %v929_v11, %v912_v40  ;;  %v4778_v23 = vld [vmem:[#allocation8 + $0x2b0] ss:$24 sps:$4 sm:$0xff]   ;;  %vm4129_vm7 = vcmask 1024  }
 0x2b8   :  { %v888_v45 = vsel %vm872_vm8, %v864_v30, %v880_v37  ;;  %1554 = vmatprep.mubr.bf16.mxu0 %v943_v38  ;;  %1607 = vmatprep.mubr.bf16.mxu1 %v943_v38  ;;  %v939_v57 = vadd.f32 %v933_v19, %v913_v43  ;;  %v4783_v24 = vld [vmem:[#allocation8 + $0x2e4] ss:$24 sps:$4 sm:$0xff]   ;;  %v4781_v25 = vld [vmem:[#allocation8 + $0x2e0] ss:$24 sps:$4 sm:$0xff]  }
 0x2b9   :  { %v914_v47 = vmul.f32 %v903_v62, %v888_v45  ;;  %v889_v48 = vsel %vm873_vm9, %v865_v36, %v881_v41  ;;  %1555 = vmatmul.mubr.bf16.vlgmr.msra.gmra.mrb[32].mxu0 %v5656_v34  ;;  %1608 = vmatmul.mubr.bf16.vlgmr.msra.gmra.mrb[24].mxu1 %v5656_v34  ;;  %v4747_v62 = vld [vmem:[#allocation8 + $0xa4] ss:$24 sps:$4 sm:$0xff]   ;;  %v4784_v26 = vld [vmem:[#allocation11] ss:$24 sps:$4 sm:$0xff]   ;;  %v4790_v29 = vld [vmem:[#allocation11 + $0x30] ss:$24 sps:$4 sm:$0xff]  }
 0x2ba   :  { %v915_v50 = vmul.f32 %v907_v3, %v889_v48  ;;  %1629 = vmatpush1.bf16.msra.mxu0 %v4736_v39  ;;  %v4753_v3 = vld [vmem:[#allocation8 + $0x104] ss:$24 sps:$4 sm:$0xff]   ;;  %v4796_v31 = vld [vmem:[#allocation11 + $0x60] ss:$24 sps:$4 sm:$0xff]   ;;  %v4802_v33 = vld [vmem:[#allocation11 + $0x90] ss:$24 sps:$4 sm:$0xff]  }
 0x2bb   :  { %1630 = vmatprep.subr.bf16.mxu0 %v4741_v42  ;;  %v940_v56 = vadd.f32 %v929_v11, %v914_v47  ;;  %v4765_v11 = vld [vmem:[#allocation8 + $0x1c4] ss:$24 sps:$4 sm:$0xff]   ;;  %v4814_v37 = vld [vmem:[#allocation11 + $0xf0] ss:$24 sps:$4 sm:$0xff]   ;;  %v4820_v39 = vld [vmem:[#allocation11 + $0x120] ss:$24 sps:$4 sm:$0xff]  }
 0x2bc   :  { %v941_v58 = vadd.f32 %v933_v19, %v915_v50  ;;  %v4772_v19 = vld [vmem:[#allocation8 + $0x250] ss:$24 sps:$4 sm:$0xff]   ;;  %v4786_v27 = vld [vmem:[#allocation11 + $0x4] ss:$24 sps:$4 sm:$0xff]   ;;  %v4792_v28 = vld [vmem:[#allocation11 + $0x34] ss:$24 sps:$4 sm:$0xff]  }
 0x2bd   :  { %v5660_v60 = vpack.c.bf16 %v940_v56, %v938_v54  ;;  %v4798_v30 = vld [vmem:[#allocation11 + $0x64] ss:$24 sps:$4 sm:$0xff]   ;;  %v4804_v32 = vld [vmem:[#allocation11 + $0x94] ss:$24 sps:$4 sm:$0xff]   ;;  %v4826_v41 = vld [vmem:[#allocation11 + $0x150] ss:$24 sps:$4 sm:$0xff]  }
 0x2be   :  { %1631 = vmatpush1.bf16.msra.mxu0 %v4739_v52  ;;  %v945_v61 = vpack.c.bf16 %v941_v58, %v939_v57  ;;  %v4810_v35 = vld [vmem:[#allocation11 + $0xc4] ss:$24 sps:$4 sm:$0xff]   ;;  %v4816_v36 = vld [vmem:[#allocation11 + $0xf4] ss:$24 sps:$4 sm:$0xff]   ;;  %v4832_v43 = vld [vmem:[#allocation11 + $0x180] ss:$24 sps:$4 sm:$0xff]  }
 0x2bf   :  { %1632 = vmatprep.subr.bf16.mxu0 %v4744_v53  ;;  %v4828_v40 = vld [vmem:[#allocation11 + $0x154] ss:$24 sps:$4 sm:$0xff]   ;;  %v4834_v42 = vld [vmem:[#allocation11 + $0x184] ss:$24 sps:$4 sm:$0xff]   ;;  %v4838_v47 = vld [vmem:[#allocation11 + $0x1b0] ss:$24 sps:$4 sm:$0xff]  }
 0x2c0   :  { %1564 = vmatprep.mubr.bf16.mxu0 %v945_v61  ;;  %1617 = vmatprep.mubr.bf16.mxu1 %v945_v61  ;;  %v4840_v45 = vld [vmem:[#allocation11 + $0x1b4] ss:$24 sps:$4 sm:$0xff]   ;;  %v4846_v48 = vld [vmem:[#allocation11 + $0x1e4] ss:$24 sps:$4 sm:$0xff]   ;;  %v4844_v50 = vld [vmem:[#allocation11 + $0x1e0] ss:$24 sps:$4 sm:$0xff]  }
 0x2c1   :  { %1565 = vmatmul.mubr.bf16.gmra.mrb[36].mxu0 %v5660_v60  ;;  %1618 = vmatmul.mubr.bf16.gmra.mrb[28].mxu1 %v5660_v60  ;;  %v4852_v52 = vld [vmem:[#allocation11 + $0x214] ss:$24 sps:$4 sm:$0xff]   ;;  %v4850_v58 = vld [vmem:[#allocation11 + $0x210] ss:$24 sps:$4 sm:$0xff]  }
 0x2c2   :  { %1633 = vmatpush1.bf16.msra.mxu0 %v4742_v63  ;;  %1660 = vmatprep.mubr.bf16.mxu0 %v943_v38  ;;  %v4822_v38 = vld [vmem:[#allocation11 + $0x124] ss:$24 sps:$4 sm:$0xff]  }
 0x2c3   :  { %1634 = vmatprep.subr.bf16.mxu0 %v4747_v62  ;;  %1757 = vmatprep.mubr.f32.mxu1 %v5324_v18 }
 0x2c6   :  { %1635 = vmatpush1.bf16.msra.mxu0 %v4745_v0 }
 0x2c7   :  { %1636 = vmatprep.subr.bf16.mxu0 %v4750_v1 }
 0x2ca   :  { %1637 = vmatpush1.bf16.msra.mxu0 %v4748_v2 }
 0x2cb   :  { %1638 = vmatprep.subr.bf16.mxu0 %v4753_v3 }
 0x2ce   :  { %1639 = vmatpush1.bf16.msra.mxu0 %v4751_v4 }
 0x2cf   :  { %1640 = vmatprep.subr.bf16.mxu0 %v4756_v5 }
 0x2d2   :  { %1641 = vmatpush1.bf16.msra.mxu0 %v4754_v6 }
 0x2d3   :  { %1642 = vmatprep.subr.bf16.mxu0 %v4759_v7 }
 0x2d6   :  { %1643 = vmatpush1.bf16.msra.mxu0 %v4757_v8 }
 0x2d7   :  { %1644 = vmatprep.subr.bf16.mxu0 %v4762_v9 }
 0x2da   :  { %1645 = vmatpush1.bf16.msra.mxu0 %v4760_v10 }
 0x2db   :  { %1646 = vmatprep.subr.bf16.mxu0 %v4765_v11 }
 0x2de   :  { %1647 = vmatpush1.bf16.msra.mxu0 %v4763_v12 }
 0x2df   :  { %1648 = vmatprep.subr.bf16.mxu0 %v4768_v13 }
 0x2e2   :  { %1649 = vmatpush1.bf16.msra.mxu0 %v4766_v14 }
 0x2e3   :  { %1650 = vmatprep.subr.bf16.mxu0 %v4771_v15 }
 0x2e6   :  { %1651 = vmatpush1.bf16.msra.mxu0 %v4769_v16  ;;  %v1683_v16 = vld [vmem:[#allocation7 + $0x10] sm:$0xff] }
 0x2e7   :  { %1652 = vmatprep.subr.bf16.mxu0 %v4774_v17  ;;  %v1684_v17 = vld [vmem:[#allocation7 + $0x18] sm:$0xff] }
 0x2ea   :  { %1653 = vmatpush1.bf16.msra.mxu0 %v4772_v19  ;;  %v1681_v19 = vld [vmem:[#allocation7] sm:$0xff] }
 0x2eb   :  { %1654 = vmatprep.subr.bf16.mxu0 %v4777_v20  ;;  %v1682_v20 = vld [vmem:[#allocation7 + $0x8] sm:$0xff] }
 0x2ee   :  { %1655 = vmatpush1.bf16.msra.mxu0 %v4775_v21 }
 0x2ef   :  { %1656 = vmatprep.subr.bf16.mxu0 %v4780_v22 }
 0x2f2   :  { %1657 = vmatpush1.bf16.msra.mxu0 %v4778_v23 }
 0x2f3   :  { %1658 = vmatprep.subr.bf16.mxu0 %v4783_v24 }
 0x2f6   :  { %1659 = vmatpush1.bf16.msra.mxu0 %v4781_v25 }
 0x2f7   :  { %2598 = vmatprep.subr.bf16.mxu0 %v4786_v27 }
 0x2f9   :  { %1661 = vmatmul.mubr.bf16.vlgmr.msra.gmra.mrb[40].mxu0 %v5656_v34  ;;  %v4808_v34 = vld [vmem:[#allocation11 + $0xc0] ss:$24 sps:$4 sm:$0xff]  }
 0x2fa   :  { %1670 = vmatprep.mubr.bf16.mxu0 %v945_v61  ;;  %2599 = vmatpush1.bf16.msra.mxu0 %v4784_v26 }
 0x2fb   :  { %2600 = vmatprep.subr.bf16.mxu0 %v4792_v28 }
 0x2fe   :  { %2601 = vmatpush1.bf16.msra.mxu0 %v4790_v29 }
 0x2ff   :  { %2602 = vmatprep.subr.bf16.mxu0 %v4798_v30 }
 0x301   :  { %1671 = vmatmul.mubr.bf16.gmra.mrb[44].mxu0 %v5660_v60 }
 0x302   :  { %2603 = vmatpush1.bf16.msra.mxu0 %v4796_v31 }
 0x303   :  { %2604 = vmatprep.subr.bf16.mxu0 %v4804_v32 }
 0x306   :  { %2605 = vmatpush1.bf16.msra.mxu0 %v4802_v33  ;;  %v4789_v33 = vld [vmem:[#allocation11 + $0xc] ss:$24 sps:$4 sm:$0xff]  }
 0x307   :  { %2606 = vmatprep.subr.bf16.mxu0 %v4810_v35  ;;  %v1685_v35 = vld [vmem:[#allocation7 + $0x20] sm:$0xff] }
 0x30a   :  { %2607 = vmatpush1.bf16.msra.mxu0 %v4808_v34  ;;  %v4787_v34 = vld [vmem:[#allocation11 + $0x8] ss:$24 sps:$4 sm:$0xff]  }
 0x30b   :  { %2608 = vmatprep.subr.bf16.mxu0 %v4816_v36  ;;  %v4795_v36 = vld [vmem:[#allocation11 + $0x3c] ss:$24 sps:$4 sm:$0xff]  }
 0x30e   :  { %2609 = vmatpush1.bf16.msra.mxu0 %v4814_v37  ;;  %v1686_v37 = vld [vmem:[#allocation7 + $0x28] sm:$0xff] }
 0x30f   :  { %2610 = vmatprep.subr.bf16.mxu0 %v4822_v38  ;;  %v4793_v38 = vld [vmem:[#allocation11 + $0x38] ss:$24 sps:$4 sm:$0xff]  }
 0x312   :  { %2611 = vmatpush1.bf16.msra.mxu0 %v4820_v39  ;;  %v4801_v39 = vld [vmem:[#allocation11 + $0x6c] ss:$24 sps:$4 sm:$0xff]  }
 0x313   :  { %2612 = vmatprep.subr.bf16.mxu0 %v4828_v40  ;;  %v4799_v40 = vld [vmem:[#allocation11 + $0x68] ss:$24 sps:$4 sm:$0xff]  }
 0x316   :  { %2613 = vmatpush1.bf16.msra.mxu0 %v4826_v41  ;;  %v4807_v41 = vld [vmem:[#allocation11 + $0x9c] ss:$24 sps:$4 sm:$0xff]  }
 0x317   :  { %2614 = vmatprep.subr.bf16.mxu0 %v4834_v42  ;;  %v4805_v42 = vld [vmem:[#allocation11 + $0x98] ss:$24 sps:$4 sm:$0xff]  }
 0x31a   :  { %2615 = vmatpush1.bf16.msra.mxu0 %v4832_v43  ;;  %v4813_v43 = vld [vmem:[#allocation11 + $0xcc] ss:$24 sps:$4 sm:$0xff]  }
 0x31b   :  { %2616 = vmatprep.subr.bf16.mxu0 %v4840_v45  ;;  %v4811_v45 = vld [vmem:[#allocation11 + $0xc8] ss:$24 sps:$4 sm:$0xff]  }
 0x31e   :  { %2617 = vmatpush1.bf16.msra.mxu0 %v4838_v47  ;;  %v4819_v47 = vld [vmem:[#allocation11 + $0xfc] ss:$24 sps:$4 sm:$0xff]  }
 0x31f   :  { %2618 = vmatprep.subr.bf16.mxu0 %v4846_v48  ;;  %v4817_v48 = vld [vmem:[#allocation11 + $0xf8] ss:$24 sps:$4 sm:$0xff]  }
 0x322   :  { %2619 = vmatpush1.bf16.msra.mxu0 %v4844_v50  ;;  %v4825_v50 = vld [vmem:[#allocation11 + $0x12c] ss:$24 sps:$4 sm:$0xff]  }
 0x323   :  { %2620 = vmatprep.subr.bf16.mxu0 %v4852_v52  ;;  %v4823_v52 = vld [vmem:[#allocation11 + $0x128] ss:$24 sps:$4 sm:$0xff]  }
 0x326   :  { %2621 = vmatpush1.bf16.msra.mxu0 %v4850_v58  ;;  %v4843_v58 = vld [vmem:[#allocation11 + $0x1bc] ss:$24 sps:$4 sm:$0xff]  }
 0x38c   :  { %v1556_v53 = vpop.f32.mrb[32].mxu0  ;;  %v1609_v54 = vpop.f32.mrb[24].mxu1 }
 0x38d   :  { %v1558_v56 = vpop.f32.mrb[33].mxu0  ;;  %v1611_v57 = vpop.f32.mrb[25].mxu1 }
 0x38e   :  { %v1560_v60 = vpop.f32.mrb[34].mxu0  ;;  %v1613_v61 = vpop.f32.mrb[26].mxu1 }
 0x38f   :  { %v4544_v63 = vpack.c.bf16 %v1560_v60, %v1556_v53  ;;  %v4536_v62 = vpack.c.bf16 %v1613_v61, %v1609_v54  ;;  %v1562_v0 = vpop.f32.mrb[35].mxu0  ;;  %v1615_v1 = vpop.f32.mrb[27].mxu1  ;;  %v4831_v53 = vld [vmem:[#allocation11 + $0x15c] ss:$24 sps:$4 sm:$0xff]   ;;  %v4829_v54 = vld [vmem:[#allocation11 + $0x158] ss:$24 sps:$4 sm:$0xff]  }
 0x390   :  { %v4542_v2 = vpack.c.bf16 %v1562_v0, %v1558_v56  ;;  %v4534_v3 = vpack.c.bf16 %v1615_v1, %v1611_v57  ;;  %v4837_v56 = vld [vmem:[#allocation11 + $0x18c] ss:$24 sps:$4 sm:$0xff]   ;;  %v4835_v57 = vld [vmem:[#allocation11 + $0x188] ss:$24 sps:$4 sm:$0xff]   ;;  %v4841_v60 = vld [vmem:[#allocation11 + $0x1b8] ss:$24 sps:$4 sm:$0xff]  }
 0x391   :  { %v4849_v61 = vld [vmem:[#allocation11 + $0x1ec] ss:$24 sps:$4 sm:$0xff]   ;;  %v4853_v0 = vld [vmem:[#allocation11 + $0x218] ss:$24 sps:$4 sm:$0xff]  }
 0x392   :  { %4535 = vmatprep.subr.bf16.mxu1 %v4534_v3  ;;  %v4858_v1 = vld [vmem:[#allocation11 + $0x244] ss:$24 sps:$4 sm:$0xff]  }
 0x393   :  { %4537 = vmatpush1.bf16.msra.mxu1 %v4536_v62  ;;  %v4855_v62 = vld [vmem:[#allocation11 + $0x21c] ss:$24 sps:$4 sm:$0xff]   ;;  %v4861_v3 = vld [vmem:[#allocation11 + $0x24c] ss:$24 sps:$4 sm:$0xff]   ;;  %2622 = vmatprep.subr.bf16.mxu0 %v4858_v1 }
 0x394   :  { %v1566_v4 = vpop.f32.mrb[36].mxu0  ;;  %v1619_v5 = vpop.f32.mrb[28].mxu1  ;;  %v4885_v1 = vld [vmem:[#allocation11 + $0x44] ss:$24 sps:$4 sm:$0xff]  }
 0x395   :  { %v1568_v6 = vpop.f32.mrb[37].mxu0  ;;  %v1621_v7 = vpop.f32.mrb[29].mxu1 }
 0x396   :  { %v1570_v8 = vpop.f32.mrb[38].mxu0  ;;  %v1623_v9 = vpop.f32.mrb[30].mxu1 }
 0x397   :  { %v4548_v10 = vpack.c.bf16 %v1570_v8, %v1566_v4  ;;  %v4540_v11 = vpack.c.bf16 %v1623_v9, %v1619_v5  ;;  %v1572_v12 = vpop.f32.mrb[39].mxu0  ;;  %v1625_v13 = vpop.f32.mrb[31].mxu1  ;;  %v4859_v4 = vld [vmem:[#allocation11 + $0x248] ss:$24 sps:$4 sm:$0xff]   ;;  %v4864_v5 = vld [vmem:[#allocation11 + $0x274] ss:$24 sps:$4 sm:$0xff]  }
 0x398   :  { %v4546_v14 = vpack.c.bf16 %v1572_v12, %v1568_v6  ;;  %v4538_v15 = vpack.c.bf16 %v1625_v13, %v1621_v7  ;;  %v4862_v6 = vld [vmem:[#allocation11 + $0x270] ss:$24 sps:$4 sm:$0xff]   ;;  %v4867_v7 = vld [vmem:[#allocation11 + $0x27c] ss:$24 sps:$4 sm:$0xff]  }
 0x399   :  { %v4865_v8 = vld [vmem:[#allocation11 + $0x278] ss:$24 sps:$4 sm:$0xff]   ;;  %v4870_v9 = vld [vmem:[#allocation11 + $0x2a4] ss:$24 sps:$4 sm:$0xff]   ;;  %v4871_v12 = vld [vmem:[#allocation11 + $0x2a8] ss:$24 sps:$4 sm:$0xff]  }
 0x39a   :  { %4539 = vmatprep.subr.bf16.mxu1 %v4538_v15  ;;  %v4876_v13 = vld [vmem:[#allocation11 + $0x2d4] ss:$24 sps:$4 sm:$0xff]  }
 0x39b   :  { %4541 = vmatpush1.bf16.msra.mxu1 %v4540_v11  ;;  %v4873_v11 = vld [vmem:[#allocation11 + $0x2ac] ss:$24 sps:$4 sm:$0xff]   ;;  %v4879_v15 = vld [vmem:[#allocation11 + $0x2dc] ss:$24 sps:$4 sm:$0xff]  }
 0x39c   :  { %4543 = vmatprep.subr.bf16.mxu1 %v4542_v2  ;;  %v4856_v2 = vld [vmem:[#allocation11 + $0x240] ss:$24 sps:$4 sm:$0xff]  }
 0x39d   :  { %2623 = vmatpush1.bf16.msra.mxu0 %v4856_v2  ;;  %v4883_v2 = vld [vmem:[#allocation11 + $0x40] ss:$24 sps:$4 sm:$0xff]  }
 0x39e   :  { %4277 = vmatmul.mubr.msk.f32.vlgmr.msra.gmra.mrb[32].mxu1 %vm282_vm0, %v1683_v16  ;;  %2624 = vmatprep.subr.bf16.mxu0 %v4864_v5  ;;  %v4877_v16 = vld [vmem:[#allocation11 + $0x2d8] ss:$24 sps:$4 sm:$0xff]   ;;  %v4891_v5 = vld [vmem:[#allocation11 + $0xa4] ss:$24 sps:$4 sm:$0xff]  }
 0x39f   :  { %4545 = vmatpush1.bf16.msra.mxu1 %v4544_v63  ;;  %1763 = vmatprep.mubr.f32.mxu1 %v5324_v18  ;;  %v4847_v63 = vld [vmem:[#allocation11 + $0x1e8] ss:$24 sps:$4 sm:$0xff]  }
 0x3a0   :  { %4547 = vmatprep.subr.bf16.mxu1 %v4546_v14  ;;  %v4874_v14 = vld [vmem:[#allocation11 + $0x2d0] ss:$24 sps:$4 sm:$0xff]  }
 0x3a1   :  { %2625 = vmatpush1.bf16.msra.mxu0 %v4862_v6  ;;  %v4889_v6 = vld [vmem:[#allocation11 + $0xa0] ss:$24 sps:$4 sm:$0xff]  }
 0x3a2   :  { %4278 = vmatmul.mubr.msk.f32.gmra.mrb[34].mxu1 %vm282_vm0, %v1684_v17  ;;  %2626 = vmatprep.subr.bf16.mxu0 %v4870_v9  ;;  %v4882_v17 = vld [vmem:[#allocation11 + $0x14] ss:$24 sps:$4 sm:$0xff]   ;;  %v4897_v9 = vld [vmem:[#allocation11 + $0x104] ss:$24 sps:$4 sm:$0xff]  }
 0x3a3   :  { %4549 = vmatpush1.bf16.msra.mxu1 %v4548_v10  ;;  %1840 = vmatprep.mubr.f32.mxu1 %v5324_v18  ;;  %v4868_v10 = vld [vmem:[#allocation11 + $0x2a0] ss:$24 sps:$4 sm:$0xff]  }
 0x3a5   :  { %2627 = vmatpush1.bf16.msra.mxu0 %v4868_v10  ;;  %v4895_v10 = vld [vmem:[#allocation11 + $0x100] ss:$24 sps:$4 sm:$0xff]  }
 0x3a6   :  { %4279 = vmatmul.mubr.msk.f32.vlgmr.msra.gmra.mrb[32].mxu1 %vm282_vm0, %v1681_v19  ;;  %2628 = vmatprep.subr.bf16.mxu0 %v4876_v13  ;;  %v1940_v19 = vld [vmem:[#allocation10] sm:$0x77] }
 0x3a7   :  { %1846 = vmatprep.mubr.f32.mxu1 %v5324_v18  ;;  %v4903_v13 = vld [vmem:[#allocation11 + $0x164] ss:$24 sps:$4 sm:$0xff]  }
 0x3a9   :  { %2629 = vmatpush1.bf16.msra.mxu0 %v4874_v14  ;;  %v4901_v14 = vld [vmem:[#allocation11 + $0x160] ss:$24 sps:$4 sm:$0xff]  }
 0x3aa   :  { %4280 = vmatmul.mubr.msk.f32.gmra.mrb[34].mxu1 %vm282_vm0, %v1682_v20  ;;  %2684 = vmatprep.subr.bf16.mxu0 %v4882_v17  ;;  %v1945_v20 = vrot.slane %v1940_v19, %v5632_v44  ;;  %v4909_v17 = vld [vmem:[#allocation11 + $0x1c4] ss:$24 sps:$4 sm:$0xff]  }
 0x3ab   :  { %1923 = vmatprep.mubr.f32.mxu1 %v5324_v18 }
 0x3cc   :  { %v1662_v21 = vpop.f32.mrb[40].mxu0 }
 0x3cd   :  { %v1664_v22 = vpop.f32.mrb[41].mxu0 }
 0x3ce   :  { %v1666_v23 = vpop.f32.mrb[42].mxu0 }
 0x3cf   :  { %v4552_v24 = vpack.c.bf16 %v1666_v23, %v1662_v21  ;;  %v1668_v25 = vpop.f32.mrb[43].mxu0  ;;  %v1949_v21 = vrot.slane %v1940_v19, %v5634_v46 }
 0x3d0   :  { %v4550_v26 = vpack.c.bf16 %v1668_v25, %v1664_v22  ;;  %v1955_v22 = vrot.slane %v1945_v20, %v5632_v44  ;;  %v1979_v25 = vrot.slane %v1940_v19, %v5638_v49  ;;  %v4912_v20 = vld [vmem:[#allocation11 + $0x1f4] ss:$24 sps:$4 sm:$0xff]  }
 0x3d1   :  { %v1959_v23 = vrot.slane %v1949_v21, %v5632_v44  ;;  %v4910_v21 = vld [vmem:[#allocation11 + $0x1f0] ss:$24 sps:$4 sm:$0xff]  }
 0x3d2   :  { %4551 = vmatprep.subr.bf16.mxu1 %v4550_v26 }
 0x3d3   :  { %4553 = vmatpush1.bf16.msra.mxu1 %v4552_v24 }
 0x3d4   :  { %v1672_v27 = vpop.f32.mrb[44].mxu0 }
 0x3d5   :  { %v1674_v28 = vpop.f32.mrb[45].mxu0 }
 0x3d6   :  { %v1676_v29 = vpop.f32.mrb[46].mxu0 }
 0x3d7   :  { %v4556_v30 = vpack.c.bf16 %v1676_v29, %v1672_v27  ;;  %v1678_v31 = vpop.f32.mrb[47].mxu0 }
 0x3d8   :  { %v4554_v32 = vpack.c.bf16 %v1678_v31, %v1674_v28  ;;  %v1983_v28 = vrot.slane %v1940_v19, %v5641_v51  ;;  %v1989_v31 = vrot.slane %v1979_v25, %v5638_v49  ;;  %v4916_v25 = vld [vmem:[#allocation11 + $0x250] ss:$24 sps:$4 sm:$0xff]  }
 0x3da   :  { %4555 = vmatprep.subr.bf16.mxu1 %v4554_v32  ;;  %v2001_v32 = vrot.slane %v1940_v19, %v5645_v55 }
 0x3db   :  { %4557 = vmatpush1.bf16.msra.mxu1 %v4556_v30 }
 0x3dc   :  { %2641 = vmatprep.subr.bf16.mxu1 %v4789_v33 }
 0x3de   :  { %4281 = vmatmul.mubr.msk.f32.vlgmr.msra.gmra.mrb[32].mxu1 %vm282_vm0, %v1685_v35 }
 0x3df   :  { %1929 = vmatprep.mubr.f32.mxu1 %v5324_v18  ;;  %2642 = vmatpush1.bf16.msra.mxu1 %v4787_v34 }
 0x3e0   :  { %2643 = vmatprep.subr.bf16.mxu1 %v4795_v36  ;;  %v1993_v36 = vrot.slane %v1983_v28, %v5638_v49  ;;  %v4924_v28 = vld [vmem:[#allocation11 + $0x2b4] ss:$24 sps:$4 sm:$0xff]  }
 0x3e2   :  { %4282 = vmatmul.mubr.msk.f32.gmra.mrb[34].mxu1 %vm282_vm0, %v1686_v37 }
 0x3e3   :  { %2644 = vmatpush1.bf16.msra.mxu1 %v4793_v38 }
 0x3e4   :  { %2645 = vmatprep.subr.bf16.mxu1 %v4801_v39  ;;  %v2005_v39 = vrot.slane %v1940_v19, %v5648_v59  ;;  %v4907_v19 = vld [vmem:[#allocation11 + $0x1c0] ss:$24 sps:$4 sm:$0xff]  }
 0x3e7   :  { %2646 = vmatpush1.bf16.msra.mxu1 %v4799_v40 }
 0x3e8   :  { %2647 = vmatprep.subr.bf16.mxu1 %v4807_v41 }
 0x3eb   :  { %2648 = vmatpush1.bf16.msra.mxu1 %v4805_v42 }
 0x3ec   :  { %2649 = vmatprep.subr.bf16.mxu1 %v4813_v43 }
 0x3ef   :  { %2650 = vmatpush1.bf16.msra.mxu1 %v4811_v45  ;;  %v2011_v45 = vrot.slane %v2001_v32, %v5645_v55  ;;  %v4931_v32 = vld [vmem:[#allocation14 + $0x8] ss:$24 sps:$4 sm:$0xff]  }
 0x3f0   :  { %2651 = vmatprep.subr.bf16.mxu1 %v4819_v47 }
 0x3f3   :  { %2652 = vmatpush1.bf16.msra.mxu1 %v4817_v48 }
 0x3f4   :  { %2653 = vmatprep.subr.bf16.mxu1 %v4825_v50 }
 0x3f7   :  { %2654 = vmatpush1.bf16.msra.mxu1 %v4823_v52  ;;  %v2015_v52 = vrot.slane %v2005_v39, %v5645_v55  ;;  %v4951_v39 = vld [vmem:[#allocation14 + $0x9c] ss:$24 sps:$4 sm:$0xff]  }
 0x3f8   :  { %2655 = vmatprep.subr.bf16.mxu1 %v4831_v53 }
 0x3fb   :  { %2656 = vmatpush1.bf16.msra.mxu1 %v4829_v54 }
 0x3fc   :  { %2657 = vmatprep.subr.bf16.mxu1 %v4837_v56 }
 0x3ff   :  { %2658 = vmatpush1.bf16.msra.mxu1 %v4835_v57 }
 0x400   :  { %2659 = vmatprep.subr.bf16.mxu1 %v4843_v58 }
 0x403   :  { %2660 = vmatpush1.bf16.msra.mxu1 %v4841_v60 }
 0x404   :  { %2661 = vmatprep.subr.bf16.mxu1 %v4849_v61 }
 0x407   :  { %2662 = vmatpush1.bf16.msra.mxu1 %v4847_v63 }
 0x408   :  { %2663 = vmatprep.subr.bf16.mxu1 %v4855_v62 }
 0x40b   :  { %2664 = vmatpush1.bf16.msra.mxu1 %v4853_v0  ;;  %v4880_v0 = vld [vmem:[#allocation11 + $0x10] ss:$24 sps:$4 sm:$0xff]  }
 0x40c   :  { %2665 = vmatprep.subr.bf16.mxu1 %v4861_v3  ;;  %v4888_v3 = vld [vmem:[#allocation11 + $0x74] ss:$24 sps:$4 sm:$0xff]  }
 0x40f   :  { %2666 = vmatpush1.bf16.msra.mxu1 %v4859_v4  ;;  %v4886_v4 = vld [vmem:[#allocation11 + $0x70] ss:$24 sps:$4 sm:$0xff]  }
 0x410   :  { %2667 = vmatprep.subr.bf16.mxu1 %v4867_v7  ;;  %v4894_v7 = vld [vmem:[#allocation11 + $0xd4] ss:$24 sps:$4 sm:$0xff]  }
 0x413   :  { %2668 = vmatpush1.bf16.msra.mxu1 %v4865_v8  ;;  %v4892_v8 = vld [vmem:[#allocation11 + $0xd0] ss:$24 sps:$4 sm:$0xff]  }
 0x414   :  { %2669 = vmatprep.subr.bf16.mxu1 %v4873_v11  ;;  %v4900_v11 = vld [vmem:[#allocation11 + $0x134] ss:$24 sps:$4 sm:$0xff]  }
 0x417   :  { %2670 = vmatpush1.bf16.msra.mxu1 %v4871_v12  ;;  %v4898_v12 = vld [vmem:[#allocation11 + $0x130] ss:$24 sps:$4 sm:$0xff]  }
 0x418   :  { %2671 = vmatprep.subr.bf16.mxu1 %v4879_v15  ;;  %v4906_v15 = vld [vmem:[#allocation11 + $0x194] ss:$24 sps:$4 sm:$0xff]  }
 0x41b   :  { %2672 = vmatpush1.bf16.msra.mxu1 %v4877_v16  ;;  %v4904_v16 = vld [vmem:[#allocation11 + $0x190] ss:$24 sps:$4 sm:$0xff]  }
 0x4b1   :  { %v1925_v24 = vpop.f32.mrb[32].mxu1 }
 0x4b2   :  { %v1960_v26 = vadd.f32 %v1955_v22, %v1925_v24  ;;  %v1927_v27 = vpop.f32.mrb[33].mxu1  ;;  %v4918_v24 = vld [vmem:[#allocation11 + $0x254] ss:$24 sps:$4 sm:$0xff]  }
 0x4b3   :  { %v1961_v29 = vadd.f32 %v1959_v23, %v1927_v27  ;;  %v4919_v27 = vld [vmem:[#allocation11 + $0x280] ss:$24 sps:$4 sm:$0xff]  }
 0x4b4   :  { %vm1964_vm10 = vcmp.gt.f32.partialorder %v1960_v26, 0.0  ;;  %v1968_v30 = vmul.f32 0.2, %v1960_v26 }
 0x4b5   :  { %vm1965_vm11 = vcmp.gt.f32.partialorder %v1961_v29, 0.0  ;;  %v1969_v33 = vmul.f32 0.2, %v1961_v29  ;;  %v1931_v35 = vpop.f32.mrb[34].mxu1 }
 0x4b6   :  { %v1972_v34 = vsel %vm1964_vm10, %v1960_v26, %v1968_v30  ;;  %v1962_v37 = vadd.f32 %v1955_v22, %v1931_v35  ;;  %v1933_v38 = vpop.f32.mrb[35].mxu1  ;;  %v4915_v22 = vld [vmem:[#allocation11 + $0x224] ss:$24 sps:$4 sm:$0xff]   ;;  %v4937_v35 = vld [vmem:[#allocation14 + $0x38] ss:$24 sps:$4 sm:$0xff]  }
 0x4b7   :  { %v1973_v40 = vsel %vm1965_vm11, %v1961_v29, %v1969_v33  ;;  %v1963_v41 = vadd.f32 %v1959_v23, %v1933_v38  ;;  %v1994_v43 = vmul.f32 %v1989_v31, %v1972_v34  ;;  %v4913_v23 = vld [vmem:[#allocation11 + $0x220] ss:$24 sps:$4 sm:$0xff]   ;;  %v4921_v26 = vld [vmem:[#allocation11 + $0x284] ss:$24 sps:$4 sm:$0xff]   ;;  %v4922_v29 = vld [vmem:[#allocation11 + $0x2b0] ss:$24 sps:$4 sm:$0xff]  }
 0x4b8   :  { %vm1966_vm12 = vcmp.gt.f32.partialorder %v1962_v37, 0.0  ;;  %v1970_v42 = vmul.f32 0.2, %v1962_v37  ;;  %v1995_v48 = vmul.f32 %v1993_v36, %v1973_v40  ;;  %v4927_v30 = vld [vmem:[#allocation11 + $0x2e4] ss:$24 sps:$4 sm:$0xff]  }
 0x4b9   :  { %vm1967_vm13 = vcmp.gt.f32.partialorder %v1963_v41, 0.0  ;;  %v1971_v47 = vmul.f32 0.2, %v1963_v41  ;;  %v2016_v57 = vadd.f32 %v2011_v45, %v1994_v43  ;;  %v4933_v33 = vld [vmem:[#allocation14 + $0xc] ss:$24 sps:$4 sm:$0xff]  }
 0x4ba   :  { %v1974_v50 = vsel %vm1966_vm12, %v1962_v37, %v1970_v42  ;;  %v2017_v60 = vadd.f32 %v2015_v52, %v1995_v48  ;;  %v4939_v34 = vld [vmem:[#allocation14 + $0x3c] ss:$24 sps:$4 sm:$0xff]   ;;  %v4945_v37 = vld [vmem:[#allocation14 + $0x6c] ss:$24 sps:$4 sm:$0xff]   ;;  %v4949_v38 = vld [vmem:[#allocation14 + $0x98] ss:$24 sps:$4 sm:$0xff]  }
 0x4bb   :  { %v1996_v53 = vmul.f32 %v1989_v31, %v1974_v50  ;;  %v1975_v54 = vsel %vm1967_vm13, %v1963_v41, %v1971_v47  ;;  %v4925_v31 = vld [vmem:[#allocation11 + $0x2e0] ss:$24 sps:$4 sm:$0xff]   ;;  %v4955_v40 = vld [vmem:[#allocation14 + $0xc8] ss:$24 sps:$4 sm:$0xff]   ;;  %v4957_v41 = vld [vmem:[#allocation14 + $0xcc] ss:$24 sps:$4 sm:$0xff]  }
 0x4bc   :  { %v1997_v56 = vmul.f32 %v1993_v36, %v1975_v54  ;;  %v4943_v36 = vld [vmem:[#allocation14 + $0x68] ss:$24 sps:$4 sm:$0xff]   ;;  %v4961_v42 = vld [vmem:[#allocation14 + $0xf8] ss:$24 sps:$4 sm:$0xff]   ;;  %v4963_v43 = vld [vmem:[#allocation14 + $0xfc] ss:$24 sps:$4 sm:$0xff]  }
 0x4bd   :  { %v2018_v58 = vadd.f32 %v2011_v45, %v1996_v53  ;;  %v4967_v45 = vld [vmem:[#allocation14 + $0x128] ss:$24 sps:$4 sm:$0xff]   ;;  %v4969_v47 = vld [vmem:[#allocation14 + $0x12c] ss:$24 sps:$4 sm:$0xff]   ;;  %v4973_v48 = vld [vmem:[#allocation14 + $0x158] ss:$24 sps:$4 sm:$0xff]  }
 0x4be   :  { %v2019_v61 = vadd.f32 %v2015_v52, %v1997_v56  ;;  %v4975_v50 = vld [vmem:[#allocation14 + $0x15c] ss:$24 sps:$4 sm:$0xff]   ;;  %v4979_v52 = vld [vmem:[#allocation14 + $0x188] ss:$24 sps:$4 sm:$0xff]   ;;  %v4981_v53 = vld [vmem:[#allocation14 + $0x18c] ss:$24 sps:$4 sm:$0xff]  }
 0x4bf   :  { %v5690_v63 = vpack.c.bf16 %v2018_v58, %v2016_v57  ;;  %v4985_v54 = vld [vmem:[#allocation14 + $0x1b8] ss:$24 sps:$4 sm:$0xff]   ;;  %v4987_v56 = vld [vmem:[#allocation14 + $0x1bc] ss:$24 sps:$4 sm:$0xff]   ;;  %v4991_v57 = vld [vmem:[#allocation14 + $0x1e8] ss:$24 sps:$4 sm:$0xff]  }
 0x4c0   :  { %v2021_v62 = vpack.c.bf16 %v2019_v61, %v2017_v60  ;;  %v4993_v58 = vld [vmem:[#allocation14 + $0x1ec] ss:$24 sps:$4 sm:$0xff]   ;;  %v4997_v60 = vld [vmem:[#allocation14 + $0x218] ss:$24 sps:$4 sm:$0xff]   ;;  %v4999_v61 = vld [vmem:[#allocation14 + $0x21c] ss:$24 sps:$4 sm:$0xff]  }
 0x4c2   :  { %2630 = vmatprep.mubr.bf16.mxu0 %v2021_v62  ;;  %2673 = vmatprep.mubr.bf16.mxu1 %v2021_v62 }
 0x4c3   :  { %2631 = vmatmul.mubr.bf16.vlgmr.msra.gmra.mrb[48].mxu0 %v5690_v63  ;;  %2674 = vmatmul.mubr.bf16.vlgmr.msra.gmra.mrb[36].mxu1 %v5690_v63 }
 0x4c4   :  { %2685 = vmatpush1.bf16.msra.mxu0 %v4880_v0  ;;  %2716 = vmatprep.mubr.bf16.mxu0 %v2021_v62  ;;  %v5005_v62 = vld [vmem:[#allocation14 + $0x24c] ss:$24 sps:$4 sm:$0xff]  }
 0x4c5   :  { %2686 = vmatprep.subr.bf16.mxu0 %v4885_v1  ;;  %2798 = vmatprep.mubr.f32.mxu1 %v5324_v18 }
 0x4c8   :  { %2687 = vmatpush1.bf16.msra.mxu0 %v4883_v2 }
 0x4c9   :  { %2688 = vmatprep.subr.bf16.mxu0 %v4888_v3 }
 0x4cc   :  { %2689 = vmatpush1.bf16.msra.mxu0 %v4886_v4 }
 0x4cd   :  { %2690 = vmatprep.subr.bf16.mxu0 %v4891_v5 }
 0x4d0   :  { %2691 = vmatpush1.bf16.msra.mxu0 %v4889_v6 }
 0x4d1   :  { %2692 = vmatprep.subr.bf16.mxu0 %v4894_v7 }
 0x4d4   :  { %2693 = vmatpush1.bf16.msra.mxu0 %v4892_v8 }
 0x4d5   :  { %2694 = vmatprep.subr.bf16.mxu0 %v4897_v9 }
 0x4d8   :  { %2695 = vmatpush1.bf16.msra.mxu0 %v4895_v10 }
 0x4d9   :  { %2696 = vmatprep.subr.bf16.mxu0 %v4900_v11 }
 0x4dc   :  { %2697 = vmatpush1.bf16.msra.mxu0 %v4898_v12  ;;  %v2728_v12 = vld [vmem:[%s5768_s7 + $0x8] sm:$0xff] }
 0x4dd   :  { %2698 = vmatprep.subr.bf16.mxu0 %v4903_v13  ;;  %v2727_v13 = vld [vmem:[%s5768_s7] sm:$0xff] }
 0x4e0   :  { %2699 = vmatpush1.bf16.msra.mxu0 %v4901_v14 }
 0x4e1   :  { %2700 = vmatprep.subr.bf16.mxu0 %v4906_v15 }
 0x4e4   :  { %2701 = vmatpush1.bf16.msra.mxu0 %v4904_v16 }
 0x4e5   :  { %2702 = vmatprep.subr.bf16.mxu0 %v4909_v17 }
 0x4e8   :  { %2703 = vmatpush1.bf16.msra.mxu0 %v4907_v19 }
 0x4e9   :  { %2704 = vmatprep.subr.bf16.mxu0 %v4912_v20 }
 0x4ec   :  { %2705 = vmatpush1.bf16.msra.mxu0 %v4910_v21  ;;  %v4930_v21 = vld [vmem:[#allocation14 + $0x4] ss:$24 sps:$4 sm:$0xff]  }
 0x4ed   :  { %2706 = vmatprep.subr.bf16.mxu0 %v4915_v22  ;;  %v2729_v22 = vld [vmem:[%s5768_s7 + $0x10] sm:$0xff] }
 0x4f0   :  { %2707 = vmatpush1.bf16.msra.mxu0 %v4913_v23  ;;  %v4928_v23 = vld [vmem:[#allocation14] ss:$24 sps:$4 sm:$0xff]  }
 0x4f1   :  { %2708 = vmatprep.subr.bf16.mxu0 %v4918_v24  ;;  %v4936_v24 = vld [vmem:[#allocation14 + $0x34] ss:$24 sps:$4 sm:$0xff]  }
 0x4f4   :  { %2709 = vmatpush1.bf16.msra.mxu0 %v4916_v25  ;;  %v4934_v25 = vld [vmem:[#allocation14 + $0x30] ss:$24 sps:$4 sm:$0xff]  }
 0x4f5   :  { %2710 = vmatprep.subr.bf16.mxu0 %v4921_v26  ;;  %v4942_v26 = vld [vmem:[#allocation14 + $0x64] ss:$24 sps:$4 sm:$0xff]  }
 0x4f8   :  { %2711 = vmatpush1.bf16.msra.mxu0 %v4919_v27  ;;  %v4940_v27 = vld [vmem:[#allocation14 + $0x60] ss:$24 sps:$4 sm:$0xff]  }
 0x4f9   :  { %2712 = vmatprep.subr.bf16.mxu0 %v4924_v28  ;;  %v4948_v28 = vld [vmem:[#allocation14 + $0x94] ss:$24 sps:$4 sm:$0xff]  }
 0x4fc   :  { %2713 = vmatpush1.bf16.msra.mxu0 %v4922_v29  ;;  %v4946_v29 = vld [vmem:[#allocation14 + $0x90] ss:$24 sps:$4 sm:$0xff]  }
 0x4fd   :  { %2714 = vmatprep.subr.bf16.mxu0 %v4927_v30  ;;  %v4954_v30 = vld [vmem:[#allocation14 + $0xc4] ss:$24 sps:$4 sm:$0xff]  }
 0x500   :  { %2715 = vmatpush1.bf16.msra.mxu0 %v4925_v31  ;;  %v4952_v31 = vld [vmem:[#allocation14 + $0xc0] ss:$24 sps:$4 sm:$0xff]  }
 0x501   :  { %3642 = vmatprep.subr.bf16.mxu0 %v4933_v33  ;;  %v4958_v33 = vld [vmem:[#allocation14 + $0xf0] ss:$24 sps:$4 sm:$0xff]  }
 0x503   :  { %2717 = vmatmul.mubr.bf16.vlgmr.msra.gmra.mrb[52].mxu0 %v5690_v63  ;;  %v5003_v63 = vld [vmem:[#allocation14 + $0x248] ss:$24 sps:$4 sm:$0xff]  }
 0x504   :  { %3643 = vmatpush1.bf16.msra.mxu0 %v4931_v32  ;;  %v4960_v32 = vld [vmem:[#allocation14 + $0xf4] ss:$24 sps:$4 sm:$0xff]  }
 0x505   :  { %3644 = vmatprep.subr.bf16.mxu0 %v4939_v34  ;;  %v4964_v34 = vld [vmem:[#allocation14 + $0x120] ss:$24 sps:$4 sm:$0xff]  }
 0x508   :  { %3645 = vmatpush1.bf16.msra.mxu0 %v4937_v35  ;;  %v4966_v35 = vld [vmem:[#allocation14 + $0x124] ss:$24 sps:$4 sm:$0xff]  }
 0x509   :  { %3646 = vmatprep.subr.bf16.mxu0 %v4945_v37  ;;  %v4970_v37 = vld [vmem:[#allocation14 + $0x150] ss:$24 sps:$4 sm:$0xff]  }
 0x50c   :  { %3647 = vmatpush1.bf16.msra.mxu0 %v4943_v36  ;;  %v4972_v36 = vld [vmem:[#allocation14 + $0x154] ss:$24 sps:$4 sm:$0xff]  }
 0x50d   :  { %3648 = vmatprep.subr.bf16.mxu0 %v4951_v39  ;;  %v4976_v39 = vld [vmem:[#allocation14 + $0x180] ss:$24 sps:$4 sm:$0xff]  }
 0x510   :  { %3649 = vmatpush1.bf16.msra.mxu0 %v4949_v38  ;;  %v4978_v38 = vld [vmem:[#allocation14 + $0x184] ss:$24 sps:$4 sm:$0xff]  }
 0x511   :  { %3650 = vmatprep.subr.bf16.mxu0 %v4957_v41  ;;  %v4982_v41 = vld [vmem:[#allocation14 + $0x1b0] ss:$24 sps:$4 sm:$0xff]  }
 0x514   :  { %3651 = vmatpush1.bf16.msra.mxu0 %v4955_v40  ;;  %v4984_v40 = vld [vmem:[#allocation14 + $0x1b4] ss:$24 sps:$4 sm:$0xff]  }
 0x515   :  { %3652 = vmatprep.subr.bf16.mxu0 %v4963_v43  ;;  %v4988_v43 = vld [vmem:[#allocation14 + $0x1e0] ss:$24 sps:$4 sm:$0xff]  }
 0x518   :  { %3653 = vmatpush1.bf16.msra.mxu0 %v4961_v42  ;;  %v4990_v42 = vld [vmem:[#allocation14 + $0x1e4] ss:$24 sps:$4 sm:$0xff]  }
 0x519   :  { %3654 = vmatprep.subr.bf16.mxu0 %v4969_v47  ;;  %v4994_v47 = vld [vmem:[#allocation14 + $0x210] ss:$24 sps:$4 sm:$0xff]  }
 0x51c   :  { %3655 = vmatpush1.bf16.msra.mxu0 %v4967_v45  ;;  %v4996_v45 = vld [vmem:[#allocation14 + $0x214] ss:$24 sps:$4 sm:$0xff]  }
 0x51d   :  { %3656 = vmatprep.subr.bf16.mxu0 %v4975_v50  ;;  %v5000_v50 = vld [vmem:[#allocation14 + $0x240] ss:$24 sps:$4 sm:$0xff]  }
 0x520   :  { %3657 = vmatpush1.bf16.msra.mxu0 %v4973_v48  ;;  %v5002_v48 = vld [vmem:[#allocation14 + $0x244] ss:$24 sps:$4 sm:$0xff]  }
 0x521   :  { %3658 = vmatprep.subr.bf16.mxu0 %v4981_v53  ;;  %v5006_v53 = vld [vmem:[#allocation14 + $0x270] ss:$24 sps:$4 sm:$0xff]  }
 0x524   :  { %3659 = vmatpush1.bf16.msra.mxu0 %v4979_v52  ;;  %v5008_v52 = vld [vmem:[#allocation14 + $0x274] ss:$24 sps:$4 sm:$0xff]  }
 0x525   :  { %3660 = vmatprep.subr.bf16.mxu0 %v4987_v56  ;;  %v5009_v56 = vld [vmem:[#allocation14 + $0x278] ss:$24 sps:$4 sm:$0xff]  }
 0x528   :  { %3661 = vmatpush1.bf16.msra.mxu0 %v4985_v54  ;;  %v5011_v54 = vld [vmem:[#allocation14 + $0x27c] ss:$24 sps:$4 sm:$0xff]  }
 0x529   :  { %3662 = vmatprep.subr.bf16.mxu0 %v4993_v58  ;;  %v5012_v58 = vld [vmem:[#allocation14 + $0x2a0] ss:$24 sps:$4 sm:$0xff]  }
 0x52c   :  { %3663 = vmatpush1.bf16.msra.mxu0 %v4991_v57  ;;  %v5014_v57 = vld [vmem:[#allocation14 + $0x2a4] ss:$24 sps:$4 sm:$0xff]  }
 0x52d   :  { %3664 = vmatprep.subr.bf16.mxu0 %v4999_v61  ;;  %v5015_v61 = vld [vmem:[#allocation14 + $0x2a8] ss:$24 sps:$4 sm:$0xff]  }
 0x530   :  { %3665 = vmatpush1.bf16.msra.mxu0 %v4997_v60  ;;  %v5017_v60 = vld [vmem:[#allocation14 + $0x2ac] ss:$24 sps:$4 sm:$0xff]  }
 0x531   :  { %3666 = vmatprep.subr.bf16.mxu0 %v5005_v62  ;;  %v5020_v62 = vld [vmem:[#allocation14 + $0x2d4] ss:$24 sps:$4 sm:$0xff]  }
 0x534   :  { %3667 = vmatpush1.bf16.msra.mxu0 %v5003_v63  ;;  %v5018_v63 = vld [vmem:[#allocation14 + $0x2d0] ss:$24 sps:$4 sm:$0xff]  }
 0x535   :  { %3668 = vmatprep.subr.bf16.mxu0 %v5011_v54  ;;  %v5056_v54 = vld [vmem:[#allocation14 + $0x1f4] ss:$24 sps:$4 sm:$0xff]  }
 0x538   :  { %3669 = vmatpush1.bf16.msra.mxu0 %v5009_v56  ;;  %v5054_v56 = vld [vmem:[#allocation14 + $0x1f0] ss:$24 sps:$4 sm:$0xff]  }
 0x539   :  { %3670 = vmatprep.subr.bf16.mxu0 %v5017_v60  ;;  %v5062_v60 = vld [vmem:[#allocation14 + $0x254] ss:$24 sps:$4 sm:$0xff]  }
 0x53c   :  { %3671 = vmatpush1.bf16.msra.mxu0 %v5015_v61  ;;  %v5060_v61 = vld [vmem:[#allocation14 + $0x250] ss:$24 sps:$4 sm:$0xff]  }
 0x596   :  { %v2632_v0 = vpop.f32.mrb[48].mxu0  ;;  %v2675_v1 = vpop.f32.mrb[36].mxu1 }
 0x597   :  { %v2634_v2 = vpop.f32.mrb[49].mxu0  ;;  %v2677_v3 = vpop.f32.mrb[37].mxu1 }
 0x598   :  { %v2636_v4 = vpop.f32.mrb[50].mxu0  ;;  %v2679_v5 = vpop.f32.mrb[38].mxu1 }
 0x599   :  { %v4564_v6 = vpack.c.bf16 %v2636_v4, %v2632_v0  ;;  %v4560_v7 = vpack.c.bf16 %v2679_v5, %v2675_v1  ;;  %v2638_v8 = vpop.f32.mrb[51].mxu0  ;;  %v2681_v9 = vpop.f32.mrb[39].mxu1  ;;  %v5021_v0 = vld [vmem:[#allocation14 + $0x2d8] ss:$24 sps:$4 sm:$0xff]   ;;  %v5023_v1 = vld [vmem:[#allocation14 + $0x2dc] ss:$24 sps:$4 sm:$0xff]  }
 0x59a   :  { %v4562_v10 = vpack.c.bf16 %v2638_v8, %v2634_v2  ;;  %v4558_v11 = vpack.c.bf16 %v2681_v9, %v2677_v3  ;;  %3672 = vmatprep.subr.bf16.mxu0 %v5023_v1  ;;  %v5026_v2 = vld [vmem:[#allocation14 + $0x14] ss:$24 sps:$4 sm:$0xff]   ;;  %v2955_v3 = vld [vmem:[#allocation13] sm:$0x77]  ;;  %v5066_v1 = vld [vmem:[#allocation14 + $0x2b0] ss:$24 sps:$4 sm:$0xff]  }
 0x59b   :  { %3673 = vmatpush1.bf16.msra.mxu0 %v5021_v0  ;;  %v2960_v4 = vrot.slane %v2955_v3, %v5632_v44  ;;  %v2964_v5 = vrot.slane %v2955_v3, %v5634_v46  ;;  %v2990_v9 = vrot.slane %v2955_v3, %v5641_v51  ;;  %v5068_v0 = vld [vmem:[#allocation14 + $0x2b4] ss:$24 sps:$4 sm:$0xff]  }
 0x59c   :  { %4559 = vmatprep.subr.bf16.mxu1 %v4558_v11  ;;  %v3006_v11 = vrot.slane %v2955_v3, %v5645_v55 }
 0x59d   :  { %4561 = vmatpush1.bf16.msra.mxu1 %v4560_v7  ;;  %v2986_v7 = vrot.slane %v2955_v3, %v5638_v49  ;;  %v2974_v8 = vrot.slane %v2964_v5, %v5632_v44 }
 0x59e   :  { %4563 = vmatprep.subr.bf16.mxu1 %v4562_v10 }
 0x5a0   :  { %4379 = vmatmul.mubr.msk.f32.vlgmr.msra.gmra.mrb[40].mxu1 %vm2730_vm14, %v2728_v12 }
 0x5a1   :  { %4565 = vmatpush1.bf16.msra.mxu1 %v4564_v6  ;;  %2872 = vmatprep.mubr.f32.mxu1 %v5324_v18  ;;  %v2970_v6 = vrot.slane %v2960_v4, %v5632_v44 }
 0x5a8   :  { %4380 = vmatmul.mubr.msk.f32.vlgmr.msra.gmra.mrb[40].mxu1 %vm2730_vm14, %v2727_v13 }
 0x5a9   :  { %2946 = vmatprep.mubr.f32.mxu1 %v5324_v18 }
 0x5d6   :  { %v2718_v14 = vpop.f32.mrb[52].mxu0 }
 0x5d7   :  { %v2720_v15 = vpop.f32.mrb[53].mxu0 }
 0x5d8   :  { %v2722_v16 = vpop.f32.mrb[54].mxu0 }
 0x5d9   :  { %v4568_v17 = vpack.c.bf16 %v2722_v16, %v2718_v14  ;;  %v2724_v19 = vpop.f32.mrb[55].mxu0  ;;  %v3010_v14 = vrot.slane %v2955_v3, %v5648_v59  ;;  %v5069_v3 = vld [vmem:[#allocation14 + $0x2e0] ss:$24 sps:$4 sm:$0xff]  }
 0x5da   :  { %v4566_v20 = vpack.c.bf16 %v2724_v19, %v2720_v15  ;;  %v2996_v15 = vrot.slane %v2986_v7, %v5638_v49  ;;  %v3000_v19 = vrot.slane %v2990_v9, %v5638_v49 }
 0x5dc   :  { %4567 = vmatprep.subr.bf16.mxu1 %v4566_v20 }
 0x5dd   :  { %4569 = vmatpush1.bf16.msra.mxu1 %v4568_v17 }
 0x5de   :  { %3601 = vmatprep.subr.bf16.mxu1 %v4930_v21  ;;  %v3016_v21 = vrot.slane %v3006_v11, %v5645_v55 }
 0x5e0   :  { %4381 = vmatmul.mubr.msk.f32.vlgmr.msra.gmra.mrb[40].mxu1 %vm2730_vm14, %v2729_v22 }
 0x5e1   :  { %3602 = vmatpush1.bf16.msra.mxu1 %v4928_v23  ;;  %v3020_v23 = vrot.slane %v3010_v14, %v5645_v55 }
 0x5e2   :  { %3603 = vmatprep.subr.bf16.mxu1 %v4936_v24 }
 0x5e5   :  { %3604 = vmatpush1.bf16.msra.mxu1 %v4934_v25 }
 0x5e6   :  { %3605 = vmatprep.subr.bf16.mxu1 %v4942_v26 }
 0x5e9   :  { %3606 = vmatpush1.bf16.msra.mxu1 %v4940_v27 }
 0x5ea   :  { %3607 = vmatprep.subr.bf16.mxu1 %v4948_v28 }
 0x5ed   :  { %3608 = vmatpush1.bf16.msra.mxu1 %v4946_v29 }
 0x5ee   :  { %3609 = vmatprep.subr.bf16.mxu1 %v4954_v30  ;;  %v5024_v30 = vld [vmem:[#allocation14 + $0x10] ss:$24 sps:$4 sm:$0xff]  }
 0x5f1   :  { %3610 = vmatpush1.bf16.msra.mxu1 %v4952_v31 }
 0x5f2   :  { %3611 = vmatprep.subr.bf16.mxu1 %v4960_v32  ;;  %v5029_v32 = vld [vmem:[#allocation14 + $0x44] ss:$24 sps:$4 sm:$0xff]  }
 0x5f5   :  { %3612 = vmatpush1.bf16.msra.mxu1 %v4958_v33  ;;  %v5027_v33 = vld [vmem:[#allocation14 + $0x40] ss:$24 sps:$4 sm:$0xff]  }
 0x5f6   :  { %3613 = vmatprep.subr.bf16.mxu1 %v4966_v35  ;;  %v5032_v35 = vld [vmem:[#allocation14 + $0x74] ss:$24 sps:$4 sm:$0xff]  }
 0x5f9   :  { %3614 = vmatpush1.bf16.msra.mxu1 %v4964_v34  ;;  %v5030_v34 = vld [vmem:[#allocation14 + $0x70] ss:$24 sps:$4 sm:$0xff]  }
 0x5fa   :  { %3615 = vmatprep.subr.bf16.mxu1 %v4972_v36  ;;  %v5035_v36 = vld [vmem:[#allocation14 + $0xa4] ss:$24 sps:$4 sm:$0xff]  }
 0x5fd   :  { %3616 = vmatpush1.bf16.msra.mxu1 %v4970_v37  ;;  %v5033_v37 = vld [vmem:[#allocation14 + $0xa0] ss:$24 sps:$4 sm:$0xff]  }
 0x5fe   :  { %3617 = vmatprep.subr.bf16.mxu1 %v4978_v38  ;;  %v5038_v38 = vld [vmem:[#allocation14 + $0xd4] ss:$24 sps:$4 sm:$0xff]  }
 0x601   :  { %3618 = vmatpush1.bf16.msra.mxu1 %v4976_v39  ;;  %v5036_v39 = vld [vmem:[#allocation14 + $0xd0] ss:$24 sps:$4 sm:$0xff]  }
 0x602   :  { %3619 = vmatprep.subr.bf16.mxu1 %v4984_v40  ;;  %v5041_v40 = vld [vmem:[#allocation14 + $0x104] ss:$24 sps:$4 sm:$0xff]  }
 0x605   :  { %3620 = vmatpush1.bf16.msra.mxu1 %v4982_v41  ;;  %v5039_v41 = vld [vmem:[#allocation14 + $0x100] ss:$24 sps:$4 sm:$0xff]  }
 0x606   :  { %3621 = vmatprep.subr.bf16.mxu1 %v4990_v42  ;;  %v5044_v42 = vld [vmem:[#allocation14 + $0x134] ss:$24 sps:$4 sm:$0xff]  }
 0x609   :  { %3622 = vmatpush1.bf16.msra.mxu1 %v4988_v43  ;;  %v5042_v43 = vld [vmem:[#allocation14 + $0x130] ss:$24 sps:$4 sm:$0xff]  }
 0x60a   :  { %3623 = vmatprep.subr.bf16.mxu1 %v4996_v45  ;;  %v5047_v45 = vld [vmem:[#allocation14 + $0x164] ss:$24 sps:$4 sm:$0xff]  }
 0x60d   :  { %3624 = vmatpush1.bf16.msra.mxu1 %v4994_v47  ;;  %v5045_v47 = vld [vmem:[#allocation14 + $0x160] ss:$24 sps:$4 sm:$0xff]  }
 0x60e   :  { %3625 = vmatprep.subr.bf16.mxu1 %v5002_v48  ;;  %v5050_v48 = vld [vmem:[#allocation14 + $0x194] ss:$24 sps:$4 sm:$0xff]  }
 0x611   :  { %3626 = vmatpush1.bf16.msra.mxu1 %v5000_v50  ;;  %v5048_v50 = vld [vmem:[#allocation14 + $0x190] ss:$24 sps:$4 sm:$0xff]  }
 0x612   :  { %3627 = vmatprep.subr.bf16.mxu1 %v5008_v52  ;;  %v5053_v52 = vld [vmem:[#allocation14 + $0x1c4] ss:$24 sps:$4 sm:$0xff]  }
 0x615   :  { %3628 = vmatpush1.bf16.msra.mxu1 %v5006_v53  ;;  %v5051_v53 = vld [vmem:[#allocation14 + $0x1c0] ss:$24 sps:$4 sm:$0xff]  }
 0x616   :  { %3629 = vmatprep.subr.bf16.mxu1 %v5014_v57  ;;  %v5059_v57 = vld [vmem:[#allocation14 + $0x224] ss:$24 sps:$4 sm:$0xff]  }
 0x619   :  { %3630 = vmatpush1.bf16.msra.mxu1 %v5012_v58  ;;  %v5057_v58 = vld [vmem:[#allocation14 + $0x220] ss:$24 sps:$4 sm:$0xff]  }
 0x61a   :  { %3631 = vmatprep.subr.bf16.mxu1 %v5020_v62  ;;  %v5063_v62 = vld [vmem:[#allocation14 + $0x280] ss:$24 sps:$4 sm:$0xff]  }
 0x61d   :  { %3632 = vmatpush1.bf16.msra.mxu1 %v5018_v63  ;;  %v5065_v63 = vld [vmem:[#allocation14 + $0x284] ss:$24 sps:$4 sm:$0xff]  }
 0x61e   :  { %3683 = vmatprep.subr.bf16.mxu1 %v5026_v2  ;;  %v5071_v2 = vld [vmem:[#allocation14 + $0x2e4] ss:$24 sps:$4 sm:$0xff]  }
 0x6b3   :  { %v2948_v10 = vpop.f32.mrb[40].mxu1 }
 0x6b4   :  { %v2975_v12 = vadd.f32 %v2970_v6, %v2948_v10  ;;  %v2950_v13 = vpop.f32.mrb[41].mxu1 }
 0x6b5   :  { %v2976_v16 = vadd.f32 %v2974_v8, %v2950_v13  ;;  %v3725_v8 = vld [vmem:[%s5771_s10 + $0x4] sm:$0xf]  ;;  %v3724_v13 = vld [vmem:[%s5771_s10] sm:$0xf] }
 0x6b6   :  { %vm2977_vm15 = vcmp.gt.f32.partialorder %v2975_v12, 0.0  ;;  %v2979_v17 = vmul.f32 0.2, %v2975_v12 }
 0x6b7   :  { %vm2978_vm0 = vcmp.gt.f32.partialorder %v2976_v16, 0.0  ;;  %v2980_v20 = vmul.f32 0.2, %v2976_v16 }
 0x6b8   :  { %v2981_v22 = vsel %vm2977_vm15, %v2975_v12, %v2979_v17 }
 0x6b9   :  { %v3001_v24 = vmul.f32 %v2996_v15, %v2981_v22  ;;  %v2982_v25 = vsel %vm2978_vm0, %v2976_v16, %v2980_v20  ;;  %v3726_v16 = vld [vmem:[%s5771_s10 + $0x8] sm:$0xf]  ;;  %v3952_v20 = vld [vmem:[%s5773_s12] sm:$0x77] }
 0x6ba   :  { %v3002_v26 = vmul.f32 %v3000_v19, %v2982_v25  ;;  %v3961_v22 = vrot.slane %v3952_v20, %v5634_v46 }
 0x6bb   :  { %v3021_v27 = vadd.f32 %v3016_v21, %v3001_v24  ;;  %v3957_v21 = vrot.slane %v3952_v20, %v5632_v44  ;;  %v3983_v24 = vrot.slane %v3952_v20, %v5638_v49 }
 0x6bc   :  { %v3022_v28 = vadd.f32 %v3020_v23, %v3002_v26  ;;  %v3971_v25 = vrot.slane %v3961_v22, %v5632_v44  ;;  %v3987_v26 = vrot.slane %v3952_v20, %v5641_v51 }
 0x6bd   :  { %v5722_v31 = vpack.c.bf16 %v3021_v27, %v3021_v27  ;;  %v3967_v23 = vrot.slane %v3957_v21, %v5632_v44 }
 0x6be   :  { %v3024_v29 = vpack.c.bf16 %v3022_v28, %v3022_v28  ;;  %v4003_v28 = vrot.slane %v3952_v20, %v5645_v55 }
 0x6c0   :  { %3633 = vmatprep.mubr.bf16.mxu1 %v3024_v29  ;;  %3674 = vmatprep.mubr.bf16.mxu0 %v3024_v29 }
 0x6c1   :  { %3634 = vmatmul.mubr.bf16.vlgmr.msra.gmra.mrb[44].mxu1 %v5722_v31  ;;  %3675 = vmatmul.mubr.bf16.vlgmr.msra.gmra.mrb[56].mxu0 %v5722_v31 }
 0x6c2   :  { %3684 = vmatpush1.bf16.msra.mxu1 %v5024_v30  ;;  %3715 = vmatprep.mubr.bf16.mxu1 %v3024_v29  ;;  %v4007_v30 = vrot.slane %v3952_v20, %v5648_v59 }
 0x6c3   :  { %3685 = vmatprep.subr.bf16.mxu1 %v5029_v32  ;;  %3795 = vmatprep.mubr.f32.mxu0 %v5324_v18 }
 0x6c6   :  { %3686 = vmatpush1.bf16.msra.mxu1 %v5027_v33  ;;  %v3997_v33 = vrot.slane %v3987_v26, %v5638_v49 }
 0x6c7   :  { %3687 = vmatprep.subr.bf16.mxu1 %v5032_v35  ;;  %v4013_v35 = vrot.slane %v4003_v28, %v5645_v55 }
 0x6ca   :  { %3688 = vmatpush1.bf16.msra.mxu1 %v5030_v34  ;;  %v4021_v34 = vld [vmem:[#allocation16] sm:$0xff] }
 0x6cb   :  { %3689 = vmatprep.subr.bf16.mxu1 %v5035_v36  ;;  %v4017_v36 = vrot.slane %v4007_v30, %v5645_v55 }
 0x6ce   :  { %3690 = vmatpush1.bf16.msra.mxu1 %v5033_v37 }
 0x6cf   :  { %3691 = vmatprep.subr.bf16.mxu1 %v5038_v38 }
 0x6d2   :  { %3692 = vmatpush1.bf16.msra.mxu1 %v5036_v39 }
 0x6d3   :  { %3693 = vmatprep.subr.bf16.mxu1 %v5041_v40  ;;  %v4023_v40 = vcombine.high %v4021_v34, %v4021_v34 }
 0x6d6   :  { %3694 = vmatpush1.bf16.msra.mxu1 %v5039_v41 }
 0x6d7   :  { %3695 = vmatprep.subr.bf16.mxu1 %v5044_v42 }
 0x6da   :  { %3696 = vmatpush1.bf16.msra.mxu1 %v5042_v43 }
 0x6db   :  { %3697 = vmatprep.subr.bf16.mxu1 %v5047_v45  ;;  %v4020_v45 = vld [vmem:[#allocation17] sm:$0x3] }
 0x6de   :  { %3698 = vmatpush1.bf16.msra.mxu1 %v5045_v47 }
 0x6df   :  { %3699 = vmatprep.subr.bf16.mxu1 %v5050_v48 }
 0x6e2   :  { %3700 = vmatpush1.bf16.msra.mxu1 %v5048_v50 }
 0x6e3   :  { %3701 = vmatprep.subr.bf16.mxu1 %v5053_v52  ;;  %v4484_v52 = vld [vmem:[#allocation2] ss:$0 sm:$0xff] }
 0x6e6   :  { %3702 = vmatpush1.bf16.msra.mxu1 %v5051_v53 }
 0x6e7   :  { %3703 = vmatprep.subr.bf16.mxu1 %v5056_v54 }
 0x6ea   :  { %3704 = vmatpush1.bf16.msra.mxu1 %v5054_v56 }
 0x6eb   :  { %3705 = vmatprep.subr.bf16.mxu1 %v5059_v57 }
 0x6ee   :  { %3706 = vmatpush1.bf16.msra.mxu1 %v5057_v58 }
 0x6ef   :  { %3707 = vmatprep.subr.bf16.mxu1 %v5062_v60 }
 0x6f2   :  { %3708 = vmatpush1.bf16.msra.mxu1 %v5060_v61 }
 0x6f3   :  { %3709 = vmatprep.subr.bf16.mxu1 %v5065_v63 }
 0x6f6   :  { %3710 = vmatpush1.bf16.msra.mxu1 %v5063_v62 }
 0x6f7   :  { %3711 = vmatprep.subr.bf16.mxu1 %v5068_v0 }
 0x6fa   :  { %3712 = vmatpush1.bf16.msra.mxu1 %v5066_v1 }
 0x6fb   :  { %3713 = vmatprep.subr.bf16.mxu1 %v5071_v2 }
 0x6fe   :  { %3714 = vmatpush1.bf16.msra.mxu1 %v5069_v3 }
 0x701   :  { %3716 = vmatmul.mubr.bf16.vlgmr.msra.gmra.mrb[48].mxu1 %v5722_v31  ;;  %v3993_v31 = vrot.slane %v3983_v24, %v5638_v49 }
 0x794   :  { %v3635_v4 = vpop.f32.mrb[44].mxu1  ;;  %v3676_v5 = vpop.f32.mrb[56].mxu0 }
 0x795   :  { %v3637_v6 = vpop.f32.mrb[45].mxu1  ;;  %v3678_v7 = vpop.f32.mrb[57].mxu0 }
 0x796   :  { %v3639_v9 = vpop.f32.mrb[46].mxu1  ;;  %v3680_v10 = vpop.f32.mrb[58].mxu0  ;;  %3731 = vmatprep.subr.mxu0 %v3678_v7 }
 0x797   :  { %v3640_v11 = vpop.f32.mrb[47].mxu1  ;;  %v3681_v12 = vpop.f32.mrb[59].mxu0  ;;  %3732 = vmatpush1.msra.mxu0 %v3676_v5 }
 0x798   :  { %3805 = vmatprep.subr.mxu0 %v3637_v6  ;;  %4478 = vmatmul.mubr.msk.f32.vlgmr.msra.gmra.mrb[60].mxu0 %vm3727_vm1, %v3725_v8 }
 0x799   :  { %3806 = vmatpush1.msra.mxu0 %v3635_v4  ;;  %3869 = vmatprep.mubr.f32.mxu0 %v5324_v18 }
 0x7a0   :  { %4479 = vmatmul.mubr.msk.f32.vlgmr.msra.gmra.mrb[60].mxu0 %vm3727_vm1, %v3724_v13 }
 0x7a1   :  { %3943 = vmatprep.mubr.f32.mxu0 %v5324_v18 }
 0x7d4   :  { %v3717_v14 = vpop.f32.mrb[48].mxu1 }
 0x7d5   :  { %v3719_v15 = vpop.f32.mrb[49].mxu1 }
 0x7d6   :  { %v3721_v17 = vpop.f32.mrb[50].mxu1  ;;  %3879 = vmatprep.subr.mxu0 %v3719_v15 }
 0x7d7   :  { %v3722_v19 = vpop.f32.mrb[51].mxu1  ;;  %3880 = vmatpush1.msra.mxu0 %v3717_v14 }
 0x7d8   :  { %4480 = vmatmul.mubr.msk.f32.vlgmr.msra.gmra.mrb[60].mxu0 %vm3727_vm1, %v3726_v16 }
 0x7d9   :  { %4102 = vmatprep.mubr.f32.mxu0 %v5324_v18 }
 0x8ab   :  { %v3945_v27 = vpop.f32.mrb[60].mxu0 }
 0x8ac   :  { %v3972_v18 = vadd.f32 %v3967_v23, %v3945_v27  ;;  %v3947_v29 = vpop.f32.mrb[61].mxu0 }
 0x8ad   :  { %v3973_v32 = vadd.f32 %v3971_v25, %v3947_v29 }
 0x8ae   :  { %vm3974_vm2 = vcmp.gt.f32.partialorder %v3972_v18, 0.0  ;;  %v3976_v46 = vmul.f32 0.2, %v3972_v18 }
 0x8af   :  { %vm3975_vm3 = vcmp.gt.f32.partialorder %v3973_v32, 0.0  ;;  %v3977_v44 = vmul.f32 0.2, %v3973_v32 }
 0x8b0   :  { %v3978_v51 = vsel %vm3974_vm2, %v3972_v18, %v3976_v46 }
 0x8b1   :  { %v3998_v37 = vmul.f32 %v3993_v31, %v3978_v51  ;;  %v3979_v38 = vsel %vm3975_vm3, %v3973_v32, %v3977_v44 }
 0x8b2   :  { %v3999_v39 = vmul.f32 %v3997_v33, %v3979_v38 }
 0x8b3   :  { %v4018_v59 = vadd.f32 %v4013_v35, %v3998_v37 }
 0x8b4   :  { %v4019_v41 = vadd.f32 %v4017_v36, %v3999_v39 }
 0x8b5   :  { %v4025_v43 = vmul.f32 %v4021_v34, %v4018_v59 }
 0x8b6   :  { %v4026_v42 = vmul.f32 %v4023_v40, %v4019_v41 }
 0x8b8   :  { %4481 = vmatprep.subr.msk.mxu0 %vm4031_vm4, %v4026_v42 }
 0x8b9   :  { %4482 = vmatpush1.msk.msra.mxu0 %vm4031_vm4, %v4025_v43 }
 0x8ba   :  { %4483 = vmatmul.mubr.msk.f32.vlgmr.msra.gmra.mrb[62].mxu0 %vm4027_vm5, %v4020_v45 }
 0x98d   :  { %v4104_v49 = vpop.f32.mrb[62].mxu0 }
 0x98e   :  { %v4110_v47 = vsel %vm4109_vm6, %v4104_v49, 0.0  ;;  %v4106_v48 = vpop.f32.mrb[63].mxu0 }
 0x98f   :  { %v4111_v50 = vsel %vm4109_vm6, %v4106_v48, 0.0 }
 0x990   :  { %v4112_v55 = vadd.f32 %v4111_v50, %v4110_v47 }
 0x992   :  { %4113 = vadd.xlane.f32.xlu0 %v4112_v55 }
 0xa1f   :  { %v4114_v53 = vpop.xlane.xlu0 %4113 }
 0xa20   :  { %v4122_v54 = vadd.f32 %v4484_v52, %v4114_v53 }
 0xa22   :  { %v4485_v56 = vmul.f32 -1.442695, %v4122_v54 }
 0xa24   :  { %5073 = vpow2.f32 %v4485_v56 }
 0xa2e   :  { %v5074_v57 = vpop.eup %5073 }
 0xa2f   :  { %v4126_v58 = vadd.f32 1.0, %v5074_v57 }
 0xa31   :  { %5075 = vrcp.f32 %v4126_v58 }
 0xa3b   :  { %v5076_v60 = vpop.eup %5075 }
 0xa3c   :  { %4130 = vst.msk [vmem:[%s5777_s16] sm:$0x3] %vm4129_vm7, %v5076_v60 }
 0xa3d   :  { %4135 = vsyncpa [#allocation4], 1 }
 0xa3e   :  { %4136 = vsyncpa [#allocation6], 1 }
 0xa3f   :  { %4137 = vsyncpa [#allocation9], 1 }
 0xa40   :  { %4138 = vsyncpa [#allocation12], 1 }
 0xa41   :  { %4139 = vsyncpa [#allocation15], 1 }
 0xa42   :  { %4140 = vsyncpa [#allocation18], 1 }

</bundles_post_ra>
